<compile_context>
chip_gen: v7x
topology: tpu7x:2x2x1
jax: 0.10.0
libtpu: 0.0.40
codegen_flags: <defaults>
</compile_context>

<pallas_src>
import math

import jax
import jax.numpy as jnp
from jax.experimental import pallas as pl
from jax.experimental.pallas import tpu as pltpu


# ----------------------------------------------------------------------------
# Feature probes (run once; keep the script robust across jax/libtpu versions)
# ----------------------------------------------------------------------------
_CONST_PIPELINE_MODE = "unset"
_VMEM_LIMIT = None


def _probe_kernel(x_ref, o_ref):
    o_ref[...] = x_ref[...] + 1.0


def _const_pipeline_mode():
    """pl.Buffered(1) disables double-buffering for grid-constant operands
    (weights / PE / norm params): their index_map never changes across the
    (B,) grid, so a second buffer is pure VMEM waste (critical on v7x 64 MiB).
    Probed once with a tiny pallas_call; falls back to default buffering."""
    global _CONST_PIPELINE_MODE
    if _CONST_PIPELINE_MODE != "unset":
        return _CONST_PIPELINE_MODE
    mode = None
    ctor = getattr(pl, "Buffered", None)
    if ctor is not None:
        for make in (lambda: ctor(1), lambda: ctor(buffer_count=1)):
            try:
                cand = make()
                y = pl.pallas_call(
                    _probe_kernel,
                    out_shape=jax.ShapeDtypeStruct((16, 128), jnp.float32),
                    grid=(2,),
                    in_specs=[pl.BlockSpec((8, 128), lambda i: (0, 0),
                                           pipeline_mode=cand)],
                    out_specs=pl.BlockSpec((8, 128), lambda i: (i, 0)),
                )(jnp.zeros((8, 128), jnp.float32))
                jax.block_until_ready(y)
                mode = cand
                break
            except Exception:
                continue
    _CONST_PIPELINE_MODE = mode
    return mode


def _vmem_limit_bytes():
    """Per-chip VMEM budget: ~3/4 of physical, clamped to [32, 96] MiB
    (v5e/v6e: 96 MiB of 128; v7x: 48 MiB of 64)."""
    global _VMEM_LIMIT
    if _VMEM_LIMIT is None:
        cap = None
        try:
            cap = getattr(pltpu.get_tpu_info(), "vmem_capacity_bytes", None)
        except Exception:
            cap = None
        if not cap:
            cap = 64 * 1024 * 1024          # conservative: v7x physical VMEM
        _VMEM_LIMIT = int(max(32 << 20, min(96 << 20, (int(cap) * 3) // 4)))
    return _VMEM_LIMIT


# ----------------------------------------------------------------------------
# Kernel
# ----------------------------------------------------------------------------
_FF_CHUNK = 512       # bounds the live f32 (S, chunk) FFN intermediate


def make_layer_kernel(*, heads, eps, pe_scale, is_first, is_last):
    """Builds one fused EncoderLayer kernel.

    Layer 0 additionally applies `x*sqrt(d_model) + PE` in its prologue,
    layer N-1 additionally applies the final Norm in its epilogue.
    Attention is head-batched (leading `heads` axis); the 1/sqrt(dk) scale is
    pre-folded into the Q projection weights/bias at init time.
    """

    def kernel(*refs):
        it = iter(refs)
        x_ref = next(it)
        mb_ref = next(it)                          # additive mask bias (1,1,S)
        pe_ref = next(it) if is_first else None
        n1a_ref = next(it); n1b_ref = next(it)
        wqkv_ref = next(it); bqkv_ref = next(it)   # (H,D,3dk) bf16, (H,1,3dk) f32
        woh_ref = next(it); bo_ref = next(it)      # (H,dk,D) bf16, (1,D) f32
        n2a_ref = next(it); n2b_ref = next(it)
        w1_ref = next(it); b1_ref = next(it)
        w2_ref = next(it); b2_ref = next(it)
        fna_ref = next(it) if is_last else None
        fnb_ref = next(it) if is_last else None
        o_ref = next(it)

        x = x_ref[0].astype(jnp.float32)           # (S, D)
        mbias = mb_ref[0]                          # (1, S): 0 keep / -1e9 masked
        S, D = x.shape
        dk = D // heads

        if is_first:
            # Embedding scale + positional encoding (fused prologue).
            x = x * pe_scale + pe_ref[...].astype(jnp.float32)

        def layer_norm(z, a_ref, b_ref):
            # torch Norm: alpha*(z - mean)/(std_unbiased + eps) + bias.
            # Exact reciprocal: LayerNorm error compounds over N layers.
            m = jnp.mean(z, axis=-1, keepdims=True)
            c = z - m
            var = jnp.sum(c * c, axis=-1, keepdims=True) * (1.0 / (D - 1))
            inv = 1.0 / (jnp.sqrt(var) + eps)
            return (a_ref[...].astype(jnp.float32) * (c * inv)
                    + b_ref[...].astype(jnp.float32))

        # ---- self-attention sublayer (pre-norm + residual), head-batched ----
        x2 = layer_norm(x, n1a_ref, n1b_ref).astype(jnp.bfloat16)    # (S, D)
        x2h = jnp.broadcast_to(x2[None], (heads, S, D))              # (H, S, D)
        # Per-head fused Q|K|V projection: H back-to-back (S,D)x(D,3dk) MXU
        # matmuls, f32 accumulation.  Q columns already carry 1/sqrt(dk).
        qkv = jnp.einsum("hsd,hdf->hsf", x2h, wqkv_ref[...],
                         preferred_element_type=jnp.float32)         # (H,S,3dk)
        qkv = qkv + bqkv_ref[...]
        q = qkv[:, :, 0 * dk:1 * dk].astype(jnp.bfloat16)            # (H,S,dk)
        k = qkv[:, :, 1 * dk:2 * dk].astype(jnp.bfloat16)
        v = qkv[:, :, 2 * dk:3 * dk].astype(jnp.bfloat16)

        s = jnp.einsum("hqd,hkd->hqk", q, k,
                       preferred_element_type=jnp.float32)           # (H,S,S)
        # Additive mask bias (hoisted out of the head math).  Masked entries
        # underflow to 0 after exp; an all-masked row stays finite (padding).
        s = s + mbias
        s = s - jnp.max(s, axis=-1, keepdims=True)
        p = jnp.exp(s)
        p = p * pl.reciprocal(jnp.sum(p, axis=-1, keepdims=True), approx=True)
        ctx = jnp.einsum("hqk,hkd->hqd", p.astype(jnp.bfloat16), v,
                         preferred_element_type=jnp.float32)         # (H,S,dk)
        ctx = ctx.astype(jnp.bfloat16)

        # Fused "concat + Wo": accumulate each head's slice of the output
        # projection (head-major Wo); accumulator seeded from head 0.
        attn = jnp.dot(ctx[0], woh_ref[0], preferred_element_type=jnp.float32)
        for h in range(1, heads):
            attn = attn + jnp.dot(ctx[h], woh_ref[h],
                                  preferred_element_type=jnp.float32)
        x = x + attn + bo_ref[...].astype(jnp.float32)   # dropout_1 = identity

        # ---- feed-forward sublayer (pre-norm + residual), tiled over d_ff ----
        x2 = layer_norm(x, n2a_ref, n2b_ref).astype(jnp.bfloat16)
        d_ff = w1_ref.shape[1]
        ff = None
        c0 = 0
        while c0 < d_ff:                     # static (trace-time) chunk loop
            c1 = min(c0 + _FF_CHUNK, d_ff)
            h1 = jnp.dot(x2, w1_ref[:, c0:c1],
                         preferred_element_type=jnp.float32)
            h1 = jnp.maximum(h1 + b1_ref[:, c0:c1], 0.0)
            part = jnp.dot(h1.astype(jnp.bfloat16), w2_ref[c0:c1, :],
                           preferred_element_type=jnp.float32)
            ff = part if ff is None else ff + part
            c0 = c1
        x = x + ff + b2_ref[...].astype(jnp.float32)     # dropout_2 = identity

        if is_last:
            x = layer_norm(x, fna_ref, fnb_ref)          # final encoder Norm

        o_ref[0] = x.astype(o_ref.dtype)

    return kernel


# ----------------------------------------------------------------------------
# Wrapper (pallas_call plumbing)
# ----------------------------------------------------------------------------
def _const_spec(shape, pipeline_mode=None):
    nd = len(shape)
    index_map = lambda b, _nd=nd: (0,) * _nd
    if pipeline_mode is not None:
        return pl.BlockSpec(shape, index_map, pipeline_mode=pipeline_mode)
    return pl.BlockSpec(shape, index_map)


def apply_encoder_layer(x, mbias, lp, *, heads, eps=1e-6, pe=None, pe_scale=None,
                        final_norm=None, out_dtype=None):
    B, S, D = x.shape
    d_ff = lp["w1"].shape[1]
    is_first = pe is not None
    is_last = final_norm is not None
    out_dtype = out_dtype or x.dtype
    const_mode = _const_pipeline_mode()

    args = [x, mbias]
    in_specs = [pl.BlockSpec((1, S, D), lambda b: (b, 0, 0)),
                pl.BlockSpec((1, 1, S), lambda b: (b, 0, 0))]
    if is_first:
        args.append(pe)
        in_specs.append(_const_spec(pe.shape, const_mode))
    const_inputs = [lp["n1a"], lp["n1b"],
                    lp["wqkv"], lp["bqkv"],
                    lp["woh"], lp["bo"],
                    lp["n2a"], lp["n2b"],
                    lp["w1"], lp["b1"], lp["w2"], lp["b2"]]
    if is_last:
        const_inputs += [final_norm[0], final_norm[1]]
    for a in const_inputs:
        args.append(a)
        in_specs.append(_const_spec(a.shape, const_mode))

    # Advisory cost estimate so XLA schedules/overlaps the per-layer calls.
    flops = 2 * B * S * (3 * D * D          # fused QKV projection
                         + 2 * S * D        # scores + context
                         + D * D            # output projection
                         + 2 * D * d_ff)    # feed-forward
    transcendentals = B * heads * S * S + 8 * B * S
    bytes_accessed = (sum(int(a.size) * a.dtype.itemsize for a in args)
                      + int(B * S * D) * jnp.dtype(out_dtype).itemsize)
    cost = pl.CostEstimate(flops=int(flops),
                           transcendentals=int(transcendentals),
                           bytes_accessed=int(bytes_accessed))

    kernel = make_layer_kernel(heads=heads, eps=eps, pe_scale=pe_scale,
                               is_first=is_first, is_last=is_last)
    return pl.pallas_call(
        kernel,
        out_shape=jax.ShapeDtypeStruct((B, S, D), out_dtype),
        grid=(B,),
        in_specs=in_specs,
        out_specs=pl.BlockSpec((1, S, D), lambda b: (b, 0, 0)),
        compiler_params=pltpu.CompilerParams(
            dimension_semantics=("parallel",),
            vmem_limit_bytes=_vmem_limit_bytes()),
        cost_estimate=cost,
    )(*args)


# ----------------------------------------------------------------------------
# Parameter init (deterministic, synthetic) + forward
# ----------------------------------------------------------------------------
def make_pe_table(max_len, d_model):
    # Reproduces the tutorial's PositionalEncoder table construction.
    pos = jnp.arange(max_len, dtype=jnp.float32)[:, None]
    i = jnp.arange(0, d_model, 2, dtype=jnp.float32)[None, :]
    sin_part = jnp.sin(pos / jnp.power(10000.0, (2.0 * i) / d_model))
    cos_part = jnp.cos(pos / jnp.power(10000.0, (2.0 * (i + 1.0)) / d_model))
    pe = jnp.zeros((max_len, d_model), dtype=jnp.float32)
    pe = pe.at[:, 0::2].set(sin_part)
    pe = pe.at[:, 1::2].set(cos_part)
    return pe


def init_params(key, vocab_size, d_model, heads, N, d_ff, max_len):
    assert d_model % heads == 0
    keys = jax.random.split(key, 1 + 6 * N)
    scale = 0.02
    dk = d_model // heads
    inv_sqrt_dk = 1.0 / math.sqrt(dk)

    def lin(k, fan_in, fan_out):
        # weights stored as (in, out): torch Linear weight transposed
        return (jax.random.normal(k, (fan_in, fan_out), jnp.float32) * scale,
                jnp.zeros((1, fan_out), jnp.float32))

    def head_major_w(w):   # (D, D) -> (heads, D, dk)
        return jnp.transpose(w.reshape(d_model, heads, dk), (1, 0, 2))

    def head_major_b(b):   # (1, D) -> (heads, 1, dk)
        return jnp.transpose(b.reshape(1, heads, dk), (1, 0, 2))

    params = {
        "embed": jax.random.normal(keys[0], (vocab_size, d_model), jnp.float32),
        "pe": make_pe_table(max_len, d_model),
        "norm_alpha": jnp.ones((1, d_model), jnp.float32),
        "norm_bias": jnp.zeros((1, d_model), jnp.float32),
        "layers": [],
    }
    for li in range(N):
        k = keys[1 + 6 * li:1 + 6 * (li + 1)]
        wq, bq = lin(k[0], d_model, d_model)
        wk, bk = lin(k[1], d_model, d_model)
        wv, bv = lin(k[2], d_model, d_model)
        wo, bo = lin(k[3], d_model, d_model)
        w1, b1 = lin(k[4], d_model, d_ff)
        w2, b2 = lin(k[5], d_ff, d_model)

        # Fold the 1/sqrt(dk) attention scale into Q (weights AND bias).
        wq = wq * inv_sqrt_dk
        bq = bq * inv_sqrt_dk

        # Head-major fused QKV: (heads, D, 3*dk) with columns [q | k | v].
        wqkv = jnp.concatenate(
            [head_major_w(wq), head_major_w(wk), head_major_w(wv)], axis=2)
        bqkv = jnp.concatenate(
            [head_major_b(bq), head_major_b(bk), head_major_b(bv)], axis=2)

        params["layers"].append({
            "n1a": jnp.ones((1, d_model), jnp.float32),
            "n1b": jnp.zeros((1, d_model), jnp.float32),
            "wqkv": wqkv.astype(jnp.bfloat16),
            "bqkv": bqkv,
            # Head-major output projection (heads, dk, D): fuses concat + Wo.
            "woh": wo.reshape(heads, dk, d_model).astype(jnp.bfloat16),
            "bo": bo,
            "n2a": jnp.ones((1, d_model), jnp.float32),
            "n2b": jnp.zeros((1, d_model), jnp.float32),
            "w1": w1.astype(jnp.bfloat16), "b1": b1,
            "w2": w2.astype(jnp.bfloat16), "b2": b2,
        })
    return params


def encoder_forward(params, src, mask, *, d_model, heads, N):
    assert N >= 1
    # Embedding lookup is glue; everything else (PE add, attention, FFN, norms)
    # runs inside the per-layer Pallas kernels.
    x = jnp.take(params["embed"], src, axis=0)            # (B, S, D)
    # Inter-layer residual stream kept in bf16 (halves per-layer HBM traffic);
    # all in-kernel math is f32 and the final encoder output is f32.
    x = x.astype(jnp.bfloat16)
    S = src.shape[1]
    pe = params["pe"][:S]
    pe_scale = math.sqrt(d_model)
    # Additive attention bias computed once for all layers: 0 keep / -1e9 mask.
    mbias = (mask.astype(jnp.float32) - 1.0) * 1e9        # (B, 1, S)
    for i in range(N):
        is_last = i == N - 1
        x = apply_encoder_layer(
            x, mbias, params["layers"][i], heads=heads,
            pe=pe if i == 0 else None,
            pe_scale=pe_scale if i == 0 else None,
            final_norm=(params["norm_alpha"], params["norm_bias"]) if is_last else None,
            out_dtype=jnp.float32 if is_last else jnp.bfloat16)
    return x


# ----------------------------------------------------------------------------
if __name__ == "__main__":
    B, S = 2, 8
    vocab_size, d_model, heads, N, d_ff = 24, 32, 4, 2, 64
    dropout = 0.1  # eval-mode => identity

    key = jax.random.PRNGKey(0)
    k_src, k_params = jax.random.split(key)

    src = jax.random.randint(k_src, (B, S), 1, vocab_size, dtype=jnp.int32)
    src = src.at[:, -2:].set(0)                             # token 0 = padding
    mask = (src != 0).astype(jnp.float32).reshape(B, 1, S)  # (B,1,S), like src_mask

    params = init_params(k_params, vocab_size, d_model, heads, N, d_ff, max_len=S)

    out = encoder_forward(params, src, mask, d_model=d_model, heads=heads, N=N)
    out = jax.block_until_ready(out)
    assert out.shape == (B, S, d_model) and jnp.all(jnp.isfinite(out))
    print("KERNEL_OK")
</pallas_src>

<mosaic_0001>
module attributes {stable_mosaic.version = 11 : i64} {
  func.func @_probe_kernel(%arg0: i32, %arg1: memref<8x128xf32, #tpu.memory_space<vmem>>, %arg2: memref<8x128xf32, #tpu.memory_space<vmem>>) attributes {dimension_semantics = [#tpu.dimension_semantics<arbitrary>], iteration_bounds = array<i64: 2>, scalar_prefetch = 0 : i64, scratch_operands = 0 : i64, tpu.core_type = #tpu.core_type<tc>, window_params = [{pipeline_mode = #tpu.pipeline_mode<synchronous>, transform_indices = @transform_0, window_bounds = array<i64: 8, 128>}, {transform_indices = @transform_1, window_bounds = array<i64: 8, 128>}]} {
    %c0 = arith.constant 0 : index
    %c0_0 = arith.constant 0 : index
    %0 = vector.load %arg1[%c0, %c0_0] : memref<8x128xf32, #tpu.memory_space<vmem>>, vector<8x128xf32>
    %cst = arith.constant 1.000000e+00 : f32
    %1 = vector.broadcast %cst : f32 to vector<8x128xf32>
    %2 = arith.addf %0, %1 : vector<8x128xf32>
    %c0_1 = arith.constant 0 : index
    %c0_2 = arith.constant 0 : index
    %3 = vector.load %arg2[%c0_1, %c0_2] : memref<8x128xf32, #tpu.memory_space<vmem>>, vector<8x128xf32>
    tpu.vector_store %arg2[%c0_1, %c0_2], %2 {strides = array<i32>} : memref<8x128xf32, #tpu.memory_space<vmem>>, vector<8x128xf32>,
    return
  }
  func.func @transform_0(%arg0: i32) -> (i32, i32) {
    %c0_i32 = arith.constant 0 : i32
    %c0_i32_0 = arith.constant 0 : i32
    %c0_i32_1 = arith.constant 0 : i32
    return %c0_i32, %c0_i32_0 : i32, i32
  }
  func.func @transform_1(%arg0: i32) -> (i32, i32) {
    %c0_i32 = arith.constant 0 : i32
    %c0_i32_0 = arith.constant 0 : i32
    return %arg0, %c0_i32 : i32, i32
  }
}

module attributes {stable_mosaic.version = 11 : i64} {
  func.func @_probe_kernel(%arg0: i32, %arg1: memref<8x128xf32, #tpu.memory_space<vmem>>, %arg2: memref<8x128xf32, #tpu.memory_space<vmem>>) attributes {dimension_semantics = [#tpu.dimension_semantics<arbitrary>], iteration_bounds = array<i64: 2>, scalar_prefetch = 0 : i64, scratch_operands = 0 : i64, tpu.core_type = #tpu.core_type<tc>, window_params = [{pipeline_mode = #tpu.pipeline_mode<synchronous>, transform_indices = @transform_0, window_bounds = array<i64: 8, 128>}, {transform_indices = @transform_1, window_bounds = array<i64: 8, 128>}]} {
    %c0 = arith.constant 0 : index
    %c0_0 = arith.constant 0 : index
    %0 = vector.load %arg1[%c0, %c0_0] : memref<8x128xf32, #tpu.memory_space<vmem>>, vector<8x128xf32>
    %cst = arith.constant 1.000000e+00 : f32
    %1 = vector.broadcast %cst : f32 to vector<8x128xf32>
    %2 = arith.addf %0, %1 : vector<8x128xf32>
    %c0_1 = arith.constant 0 : index
    %c0_2 = arith.constant 0 : index
    %3 = vector.load %arg2[%c0_1, %c0_2] : memref<8x128xf32, #tpu.memory_space<vmem>>, vector<8x128xf32>
    tpu.vector_store %arg2[%c0_1, %c0_2], %2 {strides = array<i32>} : memref<8x128xf32, #tpu.memory_space<vmem>>, vector<8x128xf32>,
    return
  }
  func.func @transform_0(%arg0: i32) -> (i32, i32) {
    %c0_i32 = arith.constant 0 : i32
    %c0_i32_0 = arith.constant 0 : i32
    %c0_i32_1 = arith.constant 0 : i32
    return %c0_i32, %c0_i32_0 : i32, i32
  }
  func.func @transform_1(%arg0: i32) -> (i32, i32) {
    %c0_i32 = arith.constant 0 : i32
    %c0_i32_0 = arith.constant 0 : i32
    return %arg0, %c0_i32 : i32, i32
  }
}

module attributes {stable_mosaic.version = 11 : i64} {
  func.func @kernel(%arg0: i32, %arg1: memref<1x8x32xbf16, #tpu.memory_space<vmem>>, %arg2: memref<1x1x8xf32, #tpu.memory_space<vmem>>, %arg3: memref<8x32xf32, #tpu.memory_space<vmem>>, %arg4: memref<1x32xf32, #tpu.memory_space<vmem>>, %arg5: memref<1x32xf32, #tpu.memory_space<vmem>>, %arg6: memref<4x32x24xbf16, #tpu.memory_space<vmem>>, %arg7: memref<4x1x24xf32, #tpu.memory_space<vmem>>, %arg8: memref<4x8x32xbf16, #tpu.memory_space<vmem>>, %arg9: memref<1x32xf32, #tpu.memory_space<vmem>>, %arg10: memref<1x32xf32, #tpu.memory_space<vmem>>, %arg11: memref<1x32xf32, #tpu.memory_space<vmem>>, %arg12: memref<32x64xbf16, #tpu.memory_space<vmem>>, %arg13: memref<1x64xf32, #tpu.memory_space<vmem>>, %arg14: memref<64x32xbf16, #tpu.memory_space<vmem>>, %arg15: memref<1x32xf32, #tpu.memory_space<vmem>>, %arg16: memref<1x8x32xbf16, #tpu.memory_space<vmem>>) attributes {dimension_semantics = [#tpu.dimension_semantics<parallel>], iteration_bounds = array<i64: 2>, scalar_prefetch = 0 : i64, scratch_operands = 0 : i64, tpu.core_type = #tpu.core_type<tc>, window_params = [{transform_indices = @transform_0, window_bounds = array<i64: 1, 8, 32>}, {transform_indices = @transform_1, window_bounds = array<i64: 1, 1, 8>}, {pipeline_mode = #tpu.pipeline_mode<synchronous>, transform_indices = @transform_2, window_bounds = array<i64: 8, 32>}, {pipeline_mode = #tpu.pipeline_mode<synchronous>, transform_indices = @transform_3, window_bounds = array<i64: 1, 32>}, {pipeline_mode = #tpu.pipeline_mode<synchronous>, transform_indices = @transform_4, window_bounds = array<i64: 1, 32>}, {pipeline_mode = #tpu.pipeline_mode<synchronous>, transform_indices = @transform_5, window_bounds = array<i64: 4, 32, 24>}, {pipeline_mode = #tpu.pipeline_mode<synchronous>, transform_indices = @transform_6, window_bounds = array<i64: 4, 1, 24>}, {pipeline_mode = #tpu.pipeline_mode<synchronous>, transform_indices = @transform_7, window_bounds = array<i64: 4, 8, 32>}, {pipeline_mode = #tpu.pipeline_mode<synchronous>, transform_indices = @transform_8, window_bounds = array<i64: 1, 32>}, {pipeline_mode = #tpu.pipeline_mode<synchronous>, transform_indices = @transform_9, window_bounds = array<i64: 1, 32>}, {pipeline_mode = #tpu.pipeline_mode<synchronous>, transform_indices = @transform_10, window_bounds = array<i64: 1, 32>}, {pipeline_mode = #tpu.pipeline_mode<synchronous>, transform_indices = @transform_11, window_bounds = array<i64: 32, 64>}, {pipeline_mode = #tpu.pipeline_mode<synchronous>, transform_indices = @transform_12, window_bounds = array<i64: 1, 64>}, {pipeline_mode = #tpu.pipeline_mode<synchronous>, transform_indices = @transform_13, window_bounds = array<i64: 64, 32>}, {pipeline_mode = #tpu.pipeline_mode<synchronous>, transform_indices = @transform_14, window_bounds = array<i64: 1, 32>}, {transform_indices = @transform_15, window_bounds = array<i64: 1, 8, 32>}]} {
    %c0 = arith.constant 0 : index
    %c0_0 = arith.constant 0 : index
    %c0_1 = arith.constant 0 : index
    %0 = vector.load %arg1[%c0, %c0_0, %c0_1] : memref<1x8x32xbf16, #tpu.memory_space<vmem>>, vector<1x8x32xbf16>
    %1 = vector.shape_cast %0 : vector<1x8x32xbf16> to vector<8x32xbf16>
    %2 = arith.extf %1 : vector<8x32xbf16> to vector<8x32xf32>
    %c0_2 = arith.constant 0 : index
    %c0_3 = arith.constant 0 : index
    %c0_4 = arith.constant 0 : index
    %3 = vector.load %arg2[%c0_2, %c0_3, %c0_4] : memref<1x1x8xf32, #tpu.memory_space<vmem>>, vector<1x1x8xf32>
    %4 = vector.shape_cast %3 : vector<1x1x8xf32> to vector<1x8xf32>
    %cst = arith.constant 5.65685415 : f32
    %5 = vector.broadcast %cst : f32 to vector<8x32xf32>
    %6 = arith.mulf %2, %5 : vector<8x32xf32>
    %c0_5 = arith.constant 0 : index
    %c0_6 = arith.constant 0 : index
    %7 = vector.load %arg3[%c0_5, %c0_6] : memref<8x32xf32, #tpu.memory_space<vmem>>, vector<8x32xf32>
    %8 = arith.addf %6, %7 : vector<8x32xf32>
    %cst_7 = arith.constant dense<0.000000e+00> : vector<8xf32>
    %9 = vector.multi_reduction <add>, %8, %cst_7 [1] : vector<8x32xf32> to vector<8xf32>
    %10 = vector.shape_cast %9 : vector<8xf32> to vector<8x1xf32>
    %cst_8 = arith.constant 3.200000e+01 : f32
    %11 = vector.broadcast %cst_8 : f32 to vector<8x1xf32>
    %12 = arith.divf %10, %11 : vector<8x1xf32>
    %13 = vector.broadcast %12 : vector<8x1xf32> to vector<8x32xf32>
    %14 = arith.subf %8, %13 : vector<8x32xf32>
    %15 = arith.mulf %14, %14 : vector<8x32xf32>
    %cst_9 = arith.constant dense<0.000000e+00> : vector<8xf32>
    %16 = vector.multi_reduction <add>, %15, %cst_9 [1] : vector<8x32xf32> to vector<8xf32>
    %17 = vector.shape_cast %16 : vector<8xf32> to vector<8x1xf32>
    %cst_10 = arith.constant 0.0322580636 : f32
    %18 = vector.broadcast %cst_10 : f32 to vector<8x1xf32>
    %19 = arith.mulf %17, %18 : vector<8x1xf32>
    %20 = math.sqrt %19 : vector<8x1xf32>
    %cst_11 = arith.constant 9.99999997E-7 : f32
    %21 = vector.broadcast %cst_11 : f32 to vector<8x1xf32>
    %22 = arith.addf %20, %21 : vector<8x1xf32>
    %cst_12 = arith.constant 1.000000e+00 : f32
    %23 = vector.broadcast %cst_12 : f32 to vector<8x1xf32>
    %24 = arith.divf %23, %22 : vector<8x1xf32>
    %c0_13 = arith.constant 0 : index
    %c0_14 = arith.constant 0 : index
    %25 = vector.load %arg4[%c0_13, %c0_14] : memref<1x32xf32, #tpu.memory_space<vmem>>, vector<1x32xf32>
    %26 = vector.broadcast %24 : vector<8x1xf32> to vector<8x32xf32>
    %27 = arith.mulf %14, %26 : vector<8x32xf32>
    %28 = vector.broadcast %25 : vector<1x32xf32> to vector<8x32xf32>
    %29 = arith.mulf %28, %27 : vector<8x32xf32>
    %c0_15 = arith.constant 0 : index
    %c0_16 = arith.constant 0 : index
    %30 = vector.load %arg5[%c0_15, %c0_16] : memref<1x32xf32, #tpu.memory_space<vmem>>, vector<1x32xf32>
    %31 = vector.broadcast %30 : vector<1x32xf32> to vector<8x32xf32>
    %32 = arith.addf %29, %31 : vector<8x32xf32>
    %33 = arith.truncf %32 : vector<8x32xf32> to vector<8x32xbf16>
    %34 = vector.shape_cast %33 : vector<8x32xbf16> to vector<1x8x32xbf16>
    %35 = vector.shape_cast %34 : vector<1x8x32xbf16> to vector<1x8x32xbf16>
    %36 = vector.broadcast %35 : vector<1x8x32xbf16> to vector<4x8x32xbf16>
    %c0_17 = arith.constant 0 : index
    %c0_18 = arith.constant 0 : index
    %c0_19 = arith.constant 0 : index
    %37 = vector.load %arg6[%c0_17, %c0_18, %c0_19] : memref<4x32x24xbf16, #tpu.memory_space<vmem>>, vector<4x32x24xbf16>
    "tpu.trace_start"() <{level = 10 : i32, message = "hsd,hdf->hsf"}> : () -> ()
    %cst_20 = arith.constant dense<0.000000e+00> : vector<4x8x24xf32>
    %38 = tpu.matmul %36, %37, %cst_20 {dimension_numbers = #tpu.dot_dimension_numbers<[2], [1], [1], [2], [0, 0, 0, 1, 1, 2], [0], [0]>} : vector<4x8x32xbf16>, vector<4x32x24xbf16>, vector<4x8x24xf32> -> vector<4x8x24xf32>
    "tpu.trace_stop"() : () -> ()
    %c0_21 = arith.constant 0 : index
    %c0_22 = arith.constant 0 : index
    %c0_23 = arith.constant 0 : index
    %39 = vector.load %arg7[%c0_21, %c0_22, %c0_23] : memref<4x1x24xf32, #tpu.memory_space<vmem>>, vector<4x1x24xf32>
    %40 = vector.broadcast %39 : vector<4x1x24xf32> to vector<4x8x24xf32>
    %41 = arith.addf %38, %40 : vector<4x8x24xf32>
    %42 = vector.extract_strided_slice %41 {offsets = [0, 0, 0], sizes = [4, 8, 8], strides = [1, 1, 1]} : vector<4x8x24xf32> to vector<4x8x8xf32>
    %43 = arith.truncf %42 : vector<4x8x8xf32> to vector<4x8x8xbf16>
    %44 = vector.extract_strided_slice %41 {offsets = [0, 0, 8], sizes = [4, 8, 8], strides = [1, 1, 1]} : vector<4x8x24xf32> to vector<4x8x8xf32>
    %45 = arith.truncf %44 : vector<4x8x8xf32> to vector<4x8x8xbf16>
    %46 = vector.extract_strided_slice %41 {offsets = [0, 0, 16], sizes = [4, 8, 8], strides = [1, 1, 1]} : vector<4x8x24xf32> to vector<4x8x8xf32>
    %47 = arith.truncf %46 : vector<4x8x8xf32> to vector<4x8x8xbf16>
    "tpu.trace_start"() <{level = 10 : i32, message = "hqd,hkd->hqk"}> : () -> ()
    %cst_24 = arith.constant dense<0.000000e+00> : vector<4x8x8xf32>
    %48 = tpu.matmul %43, %45, %cst_24 {dimension_numbers = #tpu.dot_dimension_numbers<[2], [2], [1], [1], [0, 0, 0, 1, 1, 1], [0], [0]>} : vector<4x8x8xbf16>, vector<4x8x8xbf16>, vector<4x8x8xf32> -> vector<4x8x8xf32>
    "tpu.trace_stop"() : () -> ()
    %49 = vector.shape_cast %4 : vector<1x8xf32> to vector<1x1x8xf32>
    %50 = vector.broadcast %49 : vector<1x1x8xf32> to vector<4x8x8xf32>
    %51 = arith.addf %48, %50 : vector<4x8x8xf32>
    %cst_25 = arith.constant dense<0xFF800000> : vector<4x8xf32>
    %52 = vector.multi_reduction <maximumf>, %51, %cst_25 [2] : vector<4x8x8xf32> to vector<4x8xf32>
    %53 = vector.shape_cast %52 : vector<4x8xf32> to vector<4x8x1xf32>
    %54 = vector.broadcast %53 : vector<4x8x1xf32> to vector<4x8x8xf32>
    %55 = arith.subf %51, %54 : vector<4x8x8xf32>
    %56 = math.exp %55 : vector<4x8x8xf32>
    %cst_26 = arith.constant dense<0.000000e+00> : vector<4x8xf32>
    %57 = vector.multi_reduction <add>, %56, %cst_26 [2] : vector<4x8x8xf32> to vector<4x8xf32>
    %58 = vector.shape_cast %57 : vector<4x8xf32> to vector<4x8x1xf32>
    %59 = tpu.reciprocal %58 {approx = true} : vector<4x8x1xf32> -> vector<4x8x1xf32>
    %60 = vector.broadcast %59 : vector<4x8x1xf32> to vector<4x8x8xf32>
    %61 = arith.mulf %56, %60 : vector<4x8x8xf32>
    %62 = arith.truncf %61 : vector<4x8x8xf32> to vector<4x8x8xbf16>
    "tpu.trace_start"() <{level = 10 : i32, message = "hqk,hkd->hqd"}> : () -> ()
    %cst_27 = arith.constant dense<0.000000e+00> : vector<4x8x8xf32>
    %63 = tpu.matmul %62, %47, %cst_27 {dimension_numbers = #tpu.dot_dimension_numbers<[2], [1], [1], [2], [0, 0, 0, 1, 1, 2], [0], [0]>} : vector<4x8x8xbf16>, vector<4x8x8xbf16>, vector<4x8x8xf32> -> vector<4x8x8xf32>
    "tpu.trace_stop"() : () -> ()
    %64 = arith.truncf %63 : vector<4x8x8xf32> to vector<4x8x8xbf16>
    %65 = vector.extract_strided_slice %64 {offsets = [0, 0, 0], sizes = [1, 8, 8], strides = [1, 1, 1]} : vector<4x8x8xbf16> to vector<1x8x8xbf16>
    %66 = vector.shape_cast %65 : vector<1x8x8xbf16> to vector<8x8xbf16>
    %c0_28 = arith.constant 0 : index
    %c0_29 = arith.constant 0 : index
    %c0_30 = arith.constant 0 : index
    %67 = vector.load %arg8[%c0_28, %c0_29, %c0_30] : memref<4x8x32xbf16, #tpu.memory_space<vmem>>, vector<1x8x32xbf16>
    %68 = vector.shape_cast %67 : vector<1x8x32xbf16> to vector<8x32xbf16>
    %cst_31 = arith.constant dense<0.000000e+00> : vector<8x32xf32>
    %69 = tpu.matmul %66, %68, %cst_31 {dimension_numbers = #tpu.dot_dimension_numbers<[1], [0], [0], [1], [0, 0, 1, 1], [], []>} : vector<8x8xbf16>, vector<8x32xbf16>, vector<8x32xf32> -> vector<8x32xf32>
    %70 = vector.extract_strided_slice %64 {offsets = [1, 0, 0], sizes = [1, 8, 8], strides = [1, 1, 1]} : vector<4x8x8xbf16> to vector<1x8x8xbf16>
    %71 = vector.shape_cast %70 : vector<1x8x8xbf16> to vector<8x8xbf16>
    %c1 = arith.constant 1 : index
    %c0_32 = arith.constant 0 : index
    %c0_33 = arith.constant 0 : index
    %72 = vector.load %arg8[%c1, %c0_32, %c0_33] : memref<4x8x32xbf16, #tpu.memory_space<vmem>>, vector<1x8x32xbf16>
    %73 = vector.shape_cast %72 : vector<1x8x32xbf16> to vector<8x32xbf16>
    %cst_34 = arith.constant dense<0.000000e+00> : vector<8x32xf32>
    %74 = tpu.matmul %71, %73, %cst_34 {dimension_numbers = #tpu.dot_dimension_numbers<[1], [0], [0], [1], [0, 0, 1, 1], [], []>} : vector<8x8xbf16>, vector<8x32xbf16>, vector<8x32xf32> -> vector<8x32xf32>
    %75 = arith.addf %69, %74 : vector<8x32xf32>
    %76 = vector.extract_strided_slice %64 {offsets = [2, 0, 0], sizes = [1, 8, 8], strides = [1, 1, 1]} : vector<4x8x8xbf16> to vector<1x8x8xbf16>
    %77 = vector.shape_cast %76 : vector<1x8x8xbf16> to vector<8x8xbf16>
    %c2 = arith.constant 2 : index
    %c0_35 = arith.constant 0 : index
    %c0_36 = arith.constant 0 : index
    %78 = vector.load %arg8[%c2, %c0_35, %c0_36] : memref<4x8x32xbf16, #tpu.memory_space<vmem>>, vector<1x8x32xbf16>
    %79 = vector.shape_cast %78 : vector<1x8x32xbf16> to vector<8x32xbf16>
    %cst_37 = arith.constant dense<0.000000e+00> : vector<8x32xf32>
    %80 = tpu.matmul %77, %79, %cst_37 {dimension_numbers = #tpu.dot_dimension_numbers<[1], [0], [0], [1], [0, 0, 1, 1], [], []>} : vector<8x8xbf16>, vector<8x32xbf16>, vector<8x32xf32> -> vector<8x32xf32>
    %81 = arith.addf %75, %80 : vector<8x32xf32>
    %82 = vector.extract_strided_slice %64 {offsets = [3, 0, 0], sizes = [1, 8, 8], strides = [1, 1, 1]} : vector<4x8x8xbf16> to vector<1x8x8xbf16>
    %83 = vector.shape_cast %82 : vector<1x8x8xbf16> to vector<8x8xbf16>
    %c3 = arith.constant 3 : index
    %c0_38 = arith.constant 0 : index
    %c0_39 = arith.constant 0 : index
    %84 = vector.load %arg8[%c3, %c0_38, %c0_39] : memref<4x8x32xbf16, #tpu.memory_space<vmem>>, vector<1x8x32xbf16>
    %85 = vector.shape_cast %84 : vector<1x8x32xbf16> to vector<8x32xbf16>
    %cst_40 = arith.constant dense<0.000000e+00> : vector<8x32xf32>
    %86 = tpu.matmul %83, %85, %cst_40 {dimension_numbers = #tpu.dot_dimension_numbers<[1], [0], [0], [1], [0, 0, 1, 1], [], []>} : vector<8x8xbf16>, vector<8x32xbf16>, vector<8x32xf32> -> vector<8x32xf32>
    %87 = arith.addf %81, %86 : vector<8x32xf32>
    %88 = arith.addf %8, %87 : vector<8x32xf32>
    %c0_41 = arith.constant 0 : index
    %c0_42 = arith.constant 0 : index
    %89 = vector.load %arg9[%c0_41, %c0_42] : memref<1x32xf32, #tpu.memory_space<vmem>>, vector<1x32xf32>
    %90 = vector.broadcast %89 : vector<1x32xf32> to vector<8x32xf32>
    %91 = arith.addf %88, %90 : vector<8x32xf32>
    %cst_43 = arith.constant dense<0.000000e+00> : vector<8xf32>
    %92 = vector.multi_reduction <add>, %91, %cst_43 [1] : vector<8x32xf32> to vector<8xf32>
    %93 = vector.shape_cast %92 : vector<8xf32> to vector<8x1xf32>
    %cst_44 = arith.constant 3.200000e+01 : f32
    %94 = vector.broadcast %cst_44 : f32 to vector<8x1xf32>
    %95 = arith.divf %93, %94 : vector<8x1xf32>
    %96 = vector.broadcast %95 : vector<8x1xf32> to vector<8x32xf32>
    %97 = arith.subf %91, %96 : vector<8x32xf32>
    %98 = arith.mulf %97, %97 : vector<8x32xf32>
    %cst_45 = arith.constant dense<0.000000e+00> : vector<8xf32>
    %99 = vector.multi_reduction <add>, %98, %cst_45 [1] : vector<8x32xf32> to vector<8xf32>
    %100 = vector.shape_cast %99 : vector<8xf32> to vector<8x1xf32>
    %cst_46 = arith.constant 0.0322580636 : f32
    %101 = vector.broadcast %cst_46 : f32 to vector<8x1xf32>
    %102 = arith.mulf %100, %101 : vector<8x1xf32>
    %103 = math.sqrt %102 : vector<8x1xf32>
    %cst_47 = arith.constant 9.99999997E-7 : f32
    %104 = vector.broadcast %cst_47 : f32 to vector<8x1xf32>
    %105 = arith.addf %103, %104 : vector<8x1xf32>
    %cst_48 = arith.constant 1.000000e+00 : f32
    %106 = vector.broadcast %cst_48 : f32 to vector<8x1xf32>
    %107 = arith.divf %106, %105 : vector<8x1xf32>
    %c0_49 = arith.constant 0 : index
    %c0_50 = arith.constant 0 : index
    %108 = vector.load %arg10[%c0_49, %c0_50] : memref<1x32xf32, #tpu.memory_space<vmem>>, vector<1x32xf32>
    %109 = vector.broadcast %107 : vector<8x1xf32> to vector<8x32xf32>
    %110 = arith.mulf %97, %109 : vector<8x32xf32>
    %111 = vector.broadcast %108 : vector<1x32xf32> to vector<8x32xf32>
    %112 = arith.mulf %111, %110 : vector<8x32xf32>
    %c0_51 = arith.constant 0 : index
    %c0_52 = arith.constant 0 : index
    %113 = vector.load %arg11[%c0_51, %c0_52] : memref<1x32xf32, #tpu.memory_space<vmem>>, vector<1x32xf32>
    %114 = vector.broadcast %113 : vector<1x32xf32> to vector<8x32xf32>
    %115 = arith.addf %112, %114 : vector<8x32xf32>
    %116 = arith.truncf %115 : vector<8x32xf32> to vector<8x32xbf16>
    %c0_53 = arith.constant 0 : index
    %c0_54 = arith.constant 0 : index
    %117 = vector.load %arg12[%c0_53, %c0_54] : memref<32x64xbf16, #tpu.memory_space<vmem>>, vector<32x64xbf16>
    %cst_55 = arith.constant dense<0.000000e+00> : vector<8x64xf32>
    %118 = tpu.matmul %116, %117, %cst_55 {dimension_numbers = #tpu.dot_dimension_numbers<[1], [0], [0], [1], [0, 0, 1, 1], [], []>} : vector<8x32xbf16>, vector<32x64xbf16>, vector<8x64xf32> -> vector<8x64xf32>
    %c0_56 = arith.constant 0 : index
    %c0_57 = arith.constant 0 : index
    %119 = vector.load %arg13[%c0_56, %c0_57] : memref<1x64xf32, #tpu.memory_space<vmem>>, vector<1x64xf32>
    %120 = vector.broadcast %119 : vector<1x64xf32> to vector<8x64xf32>
    %121 = arith.addf %118, %120 : vector<8x64xf32>
    %cst_58 = arith.constant 0.000000e+00 : f32
    %122 = vector.broadcast %cst_58 : f32 to vector<8x64xf32>
    %123 = arith.maximumf %121, %122 : vector<8x64xf32>
    %124 = arith.truncf %123 : vector<8x64xf32> to vector<8x64xbf16>
    %c0_59 = arith.constant 0 : index
    %c0_60 = arith.constant 0 : index
    %125 = vector.load %arg14[%c0_59, %c0_60] : memref<64x32xbf16, #tpu.memory_space<vmem>>, vector<64x32xbf16>
    %cst_61 = arith.constant dense<0.000000e+00> : vector<8x32xf32>
    %126 = tpu.matmul %124, %125, %cst_61 {dimension_numbers = #tpu.dot_dimension_numbers<[1], [0], [0], [1], [0, 0, 1, 1], [], []>} : vector<8x64xbf16>, vector<64x32xbf16>, vector<8x32xf32> -> vector<8x32xf32>
    %127 = arith.addf %91, %126 : vector<8x32xf32>
    %c0_62 = arith.constant 0 : index
    %c0_63 = arith.constant 0 : index
    %128 = vector.load %arg15[%c0_62, %c0_63] : memref<1x32xf32, #tpu.memory_space<vmem>>, vector<1x32xf32>
    %129 = vector.broadcast %128 : vector<1x32xf32> to vector<8x32xf32>
    %130 = arith.addf %127, %129 : vector<8x32xf32>
    %131 = arith.truncf %130 : vector<8x32xf32> to vector<8x32xbf16>
    %c0_64 = arith.constant 0 : index
    %c0_65 = arith.constant 0 : index
    %c0_66 = arith.constant 0 : index
    %132 = vector.load %arg16[%c0_64, %c0_65, %c0_66] : memref<1x8x32xbf16, #tpu.memory_space<vmem>>, vector<1x8x32xbf16>
    %133 = vector.shape_cast %132 : vector<1x8x32xbf16> to vector<8x32xbf16>
    %134 = vector.shape_cast %131 : vector<8x32xbf16> to vector<1x8x32xbf16>
    tpu.vector_store %arg16[%c0_64, %c0_65, %c0_66], %134 {strides = array<i32>} : memref<1x8x32xbf16, #tpu.memory_space<vmem>>, vector<1x8x32xbf16>,
    return
  }
  func.func @transform_0(%arg0: i32) -> (i32, i32, i32) {
    %c0_i32 = arith.constant 0 : i32
    %c0_i32_0 = arith.constant 0 : i32
    %c0_i32_1 = arith.constant 0 : i32
    return %arg0, %c0_i32, %c0_i32_0 : i32, i32, i32
  }
  func.func @transform_1(%arg0: i32) -> (i32, i32, i32) {
    %c0_i32 = arith.constant 0 : i32
    %c0_i32_0 = arith.constant 0 : i32
    %c0_i32_1 = arith.constant 0 : i32
    return %arg0, %c0_i32, %c0_i32_0 : i32, i32, i32
  }
  func.func @transform_2(%arg0: i32) -> (i32, i32) {
    %c0_i32 = arith.constant 0 : i32
    %c0_i32_0 = arith.constant 0 : i32
    %c0_i32_1 = arith.constant 0 : i32
    return %c0_i32, %c0_i32_0 : i32, i32
  }
  func.func @transform_3(%arg0: i32) -> (i32, i32) {
    %c0_i32 = arith.constant 0 : i32
    %c0_i32_0 = arith.constant 0 : i32
    %c0_i32_1 = arith.constant 0 : i32
    return %c0_i32, %c0_i32_0 : i32, i32
  }
  func.func @transform_4(%arg0: i32) -> (i32, i32) {
    %c0_i32 = arith.constant 0 : i32
    %c0_i32_0 = arith.constant 0 : i32
    %c0_i32_1 = arith.constant 0 : i32
    return %c0_i32, %c0_i32_0 : i32, i32
  }
  func.func @transform_5(%arg0: i32) -> (i32, i32, i32) {
    %c0_i32 = arith.constant 0 : i32
    %c0_i32_0 = arith.constant 0 : i32
    %c0_i32_1 = arith.constant 0 : i32
    %c0_i32_2 = arith.constant 0 : i32
    return %c0_i32, %c0_i32_0, %c0_i32_1 : i32, i32, i32
  }
  func.func @transform_6(%arg0: i32) -> (i32, i32, i32) {
    %c0_i32 = arith.constant 0 : i32
    %c0_i32_0 = arith.constant 0 : i32
    %c0_i32_1 = arith.constant 0 : i32
    %c0_i32_2 = arith.constant 0 : i32
    return %c0_i32, %c0_i32_0, %c0_i32_1 : i32, i32, i32
  }
  func.func @transform_7(%arg0: i32) -> (i32, i32, i32) {
    %c0_i32 = arith.constant 0 : i32
    %c0_i32_0 = arith.constant 0 : i32
    %c0_i32_1 = arith.constant 0 : i32
    %c0_i32_2 = arith.constant 0 : i32
    return %c0_i32, %c0_i32_0, %c0_i32_1 : i32, i32, i32
  }
  func.func @transform_8(%arg0: i32) -> (i32, i32) {
    %c0_i32 = arith.constant 0 : i32
    %c0_i32_0 = arith.constant 0 : i32
    %c0_i32_1 = arith.constant 0 : i32
    return %c0_i32, %c0_i32_0 : i32, i32
  }
  func.func @transform_9(%arg0: i32) -> (i32, i32) {
    %c0_i32 = arith.constant 0 : i32
    %c0_i32_0 = arith.constant 0 : i32
    %c0_i32_1 = arith.constant 0 : i32
    return %c0_i32, %c0_i32_0 : i32, i32
  }
  func.func @transform_10(%arg0: i32) -> (i32, i32) {
    %c0_i32 = arith.constant 0 : i32
    %c0_i32_0 = arith.constant 0 : i32
    %c0_i32_1 = arith.constant 0 : i32
    return %c0_i32, %c0_i32_0 : i32, i32
  }
  func.func @transform_11(%arg0: i32) -> (i32, i32) {
    %c0_i32 = arith.constant 0 : i32
    %c0_i32_0 = arith.constant 0 : i32
    %c0_i32_1 = arith.constant 0 : i32
    return %c0_i32, %c0_i32_0 : i32, i32
  }
  func.func @transform_12(%arg0: i32) -> (i32, i32) {
    %c0_i32 = arith.constant 0 : i32
    %c0_i32_0 = arith.constant 0 : i32
    %c0_i32_1 = arith.constant 0 : i32
    return %c0_i32, %c0_i32_0 : i32, i32
  }
  func.func @transform_13(%arg0: i32) -> (i32, i32) {
    %c0_i32 = arith.constant 0 : i32
    %c0_i32_0 = arith.constant 0 : i32
    %c0_i32_1 = arith.constant 0 : i32
    return %c0_i32, %c0_i32_0 : i32, i32
  }
  func.func @transform_14(%arg0: i32) -> (i32, i32) {
    %c0_i32 = arith.constant 0 : i32
    %c0_i32_0 = arith.constant 0 : i32
    %c0_i32_1 = arith.constant 0 : i32
    return %c0_i32, %c0_i32_0 : i32, i32
  }
  func.func @transform_15(%arg0: i32) -> (i32, i32, i32) {
    %c0_i32 = arith.constant 0 : i32
    %c0_i32_0 = arith.constant 0 : i32
    %c0_i32_1 = arith.constant 0 : i32
    return %arg0, %c0_i32, %c0_i32_0 : i32, i32, i32
  }
}

</mosaic_0001>

<bundles_post_ra>
// kernel: tpu_custom_call.1
= control target key start
LH: loop header
LB: loop body
LE: loop exit
PB: predicated region body
PF: predicated region fallthrough
CT: control target
= control target key end

     0   :  { %6 = vsyncpa [#allocation3], 0  ;;  %s482_s0 = inlined_call_operand.hbm [shape: f32[8,128], index: 0, kind: input, shape index: {}]   ;;  %s483_s1 = inlined_call_operand.hbm [shape: f32[16,128], index: 1, kind: output, shape index: {}]  }
   0x1   :  { %7 = vsyncpa [#allocation4], 0 }
   0x2   :  { %9 = vsyncpa [#allocation4 + $0x1], 0  ;;  %s352_s6 = smov 0   ;;  %s354_s7 = smov 0  }
   0x3   :  { %s356_s8 = smov 0   ;;  %s358_s9 = smov 0  }
   0x4 LB: > { %s373_s10 = sadd.s32 4294967295, %s338_s9   ;;  %s184_s11 = sadd.s32 4294967294, %s338_s9   ;;  %s338_s9 = sphi %s358_s9, %s499_s9   ;;  %s334_s8 = sphi %s356_s8, %s498_s8   ;;  %s330_s7 = sphi %s354_s7, %s497_s7   ;;  %s326_s6 = sphi %s352_s6, %s496_s6  }
   0x5   : > { %s377_s12 = sadd.s32 1, %s338_s9   ;;  %s43_s13 = sadd.s32 1, %s334_s8 }
   0x6   : > { %s40_s14 = ssub.s32 %s338_s9, %s377_s12  ;;  %p53_p0 = scmp.ne.s32.totalorder %s334_s8, %s330_s7 }
   0x7   : > { %p41_p1 = scmp.eq.s32.totalorder %s40_s14, 0  ;;  %p54_p2 = scmp.eq.s32.totalorder %s373_s10, 1 }
   0x8   : > { %p59_p3 = scmp.ne.s32.totalorder %s330_s7, %s326_s6  ;;  %p60_p4 = scmp.eq.s32.totalorder %s184_s11, 1 }
   0x9   : > { %s388_s15 = scalar_select %p41_p1, %s334_s8, %s43_s13  }
   0xa   : > { %p390_p5 = por %p54_p2, %p53_p0  ;;  %p394_p6 = por %p60_p4, %p59_p3 }
   0xb   : > { %p185_p7 = scmp.ge.s32.totalorder %s338_s9, 1  ;;  %p67_p8 = scmp.lt.s32.totalorder %s338_s9, 3 }
   0xc   : > { %s487_s16 = scalar_select %p390_p5, 1, 0 }
   0xd   : > { %s488_s17 = scalar_select %p394_p6, 1, 0 }
   0xe   : > { %p484_p9 = scmp.eq.s32.totalorder %s373_s10, 0  ;;  %p401_p10 = pnand %p185_p7, %p67_p8 }
   0xf   : > { %s340_s19 = smov [#allocation2]   ;;  %s244_s24 = scalar_lea.hbm %s482_s0, 128 }
  0x10   : > { %s489_s18 = scalar_select %p401_p10, 1, 0 }
  0x11   : > { %s80_s20 = sshll.u32 %s340_s19, 4  ;;  %p200_p11 = pneg %p401_p10  ;;  %s81_s20 = int_to_ptr.vmem [resolvable:$true] %s80_s20 }
  0x12   : > { %p245_p13 = scmp.ne.s32.totalorder %s482_s0, %s244_s24  ;;  %p251_p3 = scmp.lt.u32.totalorder %s244_s24, %s482_s0 }
  0x13   : > { %p409_p12 = pnand %p484_p9, %p200_p11 }
  0x15   : > { %p246_p0 = pneg %p409_p12 }
  0x17   : > { %p247_p1 = pnand %p246_p0, %p245_p13 }
  0x19   : > { %p248_p2 = pneg %p247_p1 }
  0x1b   : > { %p253_p4 = pnand %p251_p3, %p248_p2 }
  0x1d   : > { %256 = shalt.err (!%p253_p4)
}
  0x1e   : > { %s257_s29 = scalar_lea.vmem %s81_s20, 128  ;;  %p265_p9 = scmp.lt.s32.totalorder %s81_s20, %s81_s20 }
  0x1f   : > { %p258_p7 = scmp.ne.s32.totalorder %s81_s20, %s257_s29  ;;  %p266_p6 = scmp.lt.s32.totalorder %s257_s29, %s257_s29 }
  0x21   : > { %p260_p8 = pnand %p258_p7, %p246_p0  ;;  %p267_p5 = por %p266_p6, %p265_p9 }
  0x23   : > { %p261_p11 = pneg %p260_p8 }
  0x25   : > { %p268_p10 = pnand %p267_p5, %p261_p11 }
  0x27   : > { %271 = shalt.err (!%p268_p10)
}
  0x28   : > { %203 = dma.hbm_to_vmem [thread:$0]  (!%p409_p12), %s482_s0, 128, %s81_s20, [#allocation3]  }
  0x29   : > { %p491_p13 = scmp.ne.s32.totalorder %s489_s18, 0 }
  0x2a   : > { %p492_p1 = scmp.eq.s32.totalorder (!%p491_p13), %s373_s10, 0 }
  0x2b   : > { %93 = sbr.rel (%p491_p13) target bundleno = 77 (0x4d), region = 24 }
  0x32   : > { %317 = dma.done.wait (%p492_p1), [#allocation3], 128   ;;  %p493_p0 = pmov %p492_p1 }
  0x33   : > { %s105_s3 = sand.u32 1, %s330_s7   ;;  %s191_s13 = sshll.u32 %s373_s10, 7  ;;  %v108_v0 = vld [vmem:[#allocation2] sm:$0xff] }
  0x34   : > { %319 = vsyncadd (%p493_p0), [#allocation3], 4294967168  ;;  %s189_s4 = sshll.u32 %s105_s3, 3  ;;  %v109_v1 = vadd.f32 1.0, %v108_v0  ;;  %s442_s19 = scalar_lea.hbm %s483_s1, %s191_s13 }
  0x35   : > { %s107_s5 = scalar_lea.vmem [#allocation5], %s189_s4  ;;  %s112_s20 = scalar_lea.sflag [#allocation4], %s105_s3 }
  0x36   : > { %s125_s11 = sshll.u32 %s107_s5, 4  ;;  %110 = vst [vmem:[%s107_s5] sm:$0xff] %v109_v1  ;;  %p494_p6 = scmp.ne.s32.totalorder %s487_s16, 0  ;;  %s437_s11 = int_to_ptr.vmem [resolvable:$true] %s125_s11 }
  0x37   : > { %s272_s21 = scalar_lea.vmem %s437_s11, 128  ;;  %s341_s10 = smov [#allocation5]  }
  0x38   : > { %p273_p5 = scmp.ne.s32.totalorder %s437_s11, %s272_s21  ;;  %s276_s22 = sshll.u32 %s341_s10, 4  ;;  %s277_s22 = int_to_ptr.vmem [resolvable:$false] %s276_s22 }
  0x39   : > { %s278_s23 = scalar_lea.vmem %s277_s22, 256  ;;  %p279_p12 = scmp.lt.s32.totalorder %s437_s11, %s277_s22 }
  0x3a   : > { %p274_p9 = pnand %p273_p5, %p494_p6  ;;  %p280_p2 = scmp.lt.s32.totalorder %s278_s23, %s272_s21 }
  0x3c   : > { %p275_p10 = pneg %p274_p9  ;;  %p281_p3 = por %p280_p2, %p279_p12 }
  0x3e   : > { %p282_p4 = pnand %p281_p3, %p275_p10 }
  0x40   : > { %285 = shalt.err (!%p282_p4)
}
  0x41   : > { %s286_s24 = scalar_lea.hbm %s442_s19, 128  ;;  %s290_s27 = scalar_lea.hbm %s483_s1, 256 }
  0x42   : > { %p287_p7 = scmp.ne.s32.totalorder %s442_s19, %s286_s24  ;;  %p291_p13 = scmp.lt.u32.totalorder %s442_s19, %s483_s1 }
  0x43   : > { %p292_p1 = scmp.lt.u32.totalorder %s290_s27, %s286_s24  ;;  %p294_p5 = scmp.lt.u32.totalorder %s286_s24, %s442_s19 }
  0x44   : > { %p288_p8 = pnand %p287_p7, %p494_p6 }
  0x45   : > { %p293_p0 = por %p292_p1, %p291_p13 }
  0x46   : > { %p289_p11 = pneg %p288_p8 }
  0x47   : > { %p295_p9 = por %p294_p5, %p293_p0 }
  0x49   : > { %p296_p10 = pnand %p295_p9, %p289_p11 }
  0x4b   : > { %299 = shalt.err (!%p296_p10)
}
  0x4c   : > { %198 = dma.vmem_to_hbm [thread:$0]  (%p494_p6), %s437_s11, 128, %s442_s19, %s112_s20  }
  0x4d PF: > { %p210_p12 = scmp.ge.s32.totalorder %s338_s9, 2  ;;  %s137_s30 = sand.u32 1, %s326_s6  }
  0x4e   : > { %p495_p2 = scmp.ne.s32.totalorder %s488_s17, 0  ;;  %s138_s2 = scalar_lea.sflag [#allocation4], %s137_s30 }
  0x50   : > { %p205_p3 = pnand %p210_p12, %p495_p2 }
  0x52   : > { %321 = dma.done.wait (!%p205_p3), %s138_s2, 128  }
  0x53   : > { %323 = vsyncadd (!%p205_p3), %s138_s2, 4294967168  ;;  %p12_p4 = scmp.ge.s32.totalorder %s377_s12, 4   ;;  %s496_s6 = smov %s330_s7 }
  0x54   : > { %s497_s7 = smov %s334_s8  ;;  %s498_s8 = smov %s388_s15 }
  0x55   : > { %s499_s9 = smov %s377_s12  ;;  %14 = sbr.rel (!%p12_p4) target bundleno = 4 (0x4), region = 61 }
  0x5c   :  { %143 = vsyncpa [#allocation3], 1 }
  0x5d   :  { %145 = vsyncpa [#allocation3 + $0x1], 1 }
  0x5e   :  { %146 = vsyncpa [#allocation4], 1 }
  0x5f   :  { %148 = vsyncpa [#allocation4 + $0x1], 1 }

// kernel: tpu_custom_call.1
= control target key start
LH: loop header
LB: loop body
LE: loop exit
PB: predicated region body
PF: predicated region fallthrough
CT: control target
= control target key end

     0   :  { %6 = vsyncpa [#allocation3], 0  ;;  %s482_s0 = inlined_call_operand.hbm [shape: f32[8,128], index: 0, kind: input, shape index: {}]   ;;  %s483_s1 = inlined_call_operand.hbm [shape: f32[16,128], index: 1, kind: output, shape index: {}]  }
   0x1   :  { %7 = vsyncpa [#allocation4], 0 }
   0x2   :  { %9 = vsyncpa [#allocation4 + $0x1], 0  ;;  %s352_s6 = smov 0   ;;  %s354_s7 = smov 0  }
   0x3   :  { %s356_s8 = smov 0   ;;  %s358_s9 = smov 0  }
   0x4 LB: > { %s373_s10 = sadd.s32 4294967295, %s338_s9   ;;  %s184_s11 = sadd.s32 4294967294, %s338_s9   ;;  %s338_s9 = sphi %s358_s9, %s499_s9   ;;  %s334_s8 = sphi %s356_s8, %s498_s8   ;;  %s330_s7 = sphi %s354_s7, %s497_s7   ;;  %s326_s6 = sphi %s352_s6, %s496_s6  }
   0x5   : > { %s377_s12 = sadd.s32 1, %s338_s9   ;;  %s43_s13 = sadd.s32 1, %s334_s8 }
   0x6   : > { %s40_s14 = ssub.s32 %s338_s9, %s377_s12  ;;  %p53_p0 = scmp.ne.s32.totalorder %s334_s8, %s330_s7 }
   0x7   : > { %p41_p1 = scmp.eq.s32.totalorder %s40_s14, 0  ;;  %p54_p2 = scmp.eq.s32.totalorder %s373_s10, 1 }
   0x8   : > { %p59_p3 = scmp.ne.s32.totalorder %s330_s7, %s326_s6  ;;  %p60_p4 = scmp.eq.s32.totalorder %s184_s11, 1 }
   0x9   : > { %s388_s15 = scalar_select %p41_p1, %s334_s8, %s43_s13  }
   0xa   : > { %p390_p5 = por %p54_p2, %p53_p0  ;;  %p394_p6 = por %p60_p4, %p59_p3 }
   0xb   : > { %p185_p7 = scmp.ge.s32.totalorder %s338_s9, 1  ;;  %p67_p8 = scmp.lt.s32.totalorder %s338_s9, 3 }
   0xc   : > { %s487_s16 = scalar_select %p390_p5, 1, 0 }
   0xd   : > { %s488_s17 = scalar_select %p394_p6, 1, 0 }
   0xe   : > { %p484_p9 = scmp.eq.s32.totalorder %s373_s10, 0  ;;  %p401_p10 = pnand %p185_p7, %p67_p8 }
   0xf   : > { %s340_s19 = smov [#allocation2]   ;;  %s244_s24 = scalar_lea.hbm %s482_s0, 128 }
  0x10   : > { %s489_s18 = scalar_select %p401_p10, 1, 0 }
  0x11   : > { %s80_s20 = sshll.u32 %s340_s19, 4  ;;  %p200_p11 = pneg %p401_p10  ;;  %s81_s20 = int_to_ptr.vmem [resolvable:$true] %s80_s20 }
  0x12   : > { %p245_p13 = scmp.ne.s32.totalorder %s482_s0, %s244_s24  ;;  %p251_p3 = scmp.lt.u32.totalorder %s244_s24, %s482_s0 }
  0x13   : > { %p409_p12 = pnand %p484_p9, %p200_p11 }
  0x15   : > { %p246_p0 = pneg %p409_p12 }
  0x17   : > { %p247_p1 = pnand %p246_p0, %p245_p13 }
  0x19   : > { %p248_p2 = pneg %p247_p1 }
  0x1b   : > { %p253_p4 = pnand %p251_p3, %p248_p2 }
  0x1d   : > { %256 = shalt.err (!%p253_p4)
}
  0x1e   : > { %s257_s29 = scalar_lea.vmem %s81_s20, 128  ;;  %p265_p9 = scmp.lt.s32.totalorder %s81_s20, %s81_s20 }
  0x1f   : > { %p258_p7 = scmp.ne.s32.totalorder %s81_s20, %s257_s29  ;;  %p266_p6 = scmp.lt.s32.totalorder %s257_s29, %s257_s29 }
  0x21   : > { %p260_p8 = pnand %p258_p7, %p246_p0  ;;  %p267_p5 = por %p266_p6, %p265_p9 }
  0x23   : > { %p261_p11 = pneg %p260_p8 }
  0x25   : > { %p268_p10 = pnand %p267_p5, %p261_p11 }
  0x27   : > { %271 = shalt.err (!%p268_p10)
}
  0x28   : > { %203 = dma.hbm_to_vmem [thread:$0]  (!%p409_p12), %s482_s0, 128, %s81_s20, [#allocation3]  }
  0x29   : > { %p491_p13 = scmp.ne.s32.totalorder %s489_s18, 0 }
  0x2a   : > { %p492_p1 = scmp.eq.s32.totalorder (!%p491_p13), %s373_s10, 0 }
  0x2b   : > { %93 = sbr.rel (%p491_p13) target bundleno = 77 (0x4d), region = 24 }
  0x32   : > { %317 = dma.done.wait (%p492_p1), [#allocation3], 128   ;;  %p493_p0 = pmov %p492_p1 }
  0x33   : > { %s105_s3 = sand.u32 1, %s330_s7   ;;  %s191_s13 = sshll.u32 %s373_s10, 7  ;;  %v108_v0 = vld [vmem:[#allocation2] sm:$0xff] }
  0x34   : > { %319 = vsyncadd (%p493_p0), [#allocation3], 4294967168  ;;  %s189_s4 = sshll.u32 %s105_s3, 3  ;;  %v109_v1 = vadd.f32 1.0, %v108_v0  ;;  %s442_s19 = scalar_lea.hbm %s483_s1, %s191_s13 }
  0x35   : > { %s107_s5 = scalar_lea.vmem [#allocation5], %s189_s4  ;;  %s112_s20 = scalar_lea.sflag [#allocation4], %s105_s3 }
  0x36   : > { %s125_s11 = sshll.u32 %s107_s5, 4  ;;  %110 = vst [vmem:[%s107_s5] sm:$0xff] %v109_v1  ;;  %p494_p6 = scmp.ne.s32.totalorder %s487_s16, 0  ;;  %s437_s11 = int_to_ptr.vmem [resolvable:$true] %s125_s11 }
  0x37   : > { %s272_s21 = scalar_lea.vmem %s437_s11, 128  ;;  %s341_s10 = smov [#allocation5]  }
  0x38   : > { %p273_p5 = scmp.ne.s32.totalorder %s437_s11, %s272_s21  ;;  %s276_s22 = sshll.u32 %s341_s10, 4  ;;  %s277_s22 = int_to_ptr.vmem [resolvable:$false] %s276_s22 }
  0x39   : > { %s278_s23 = scalar_lea.vmem %s277_s22, 256  ;;  %p279_p12 = scmp.lt.s32.totalorder %s437_s11, %s277_s22 }
  0x3a   : > { %p274_p9 = pnand %p273_p5, %p494_p6  ;;  %p280_p2 = scmp.lt.s32.totalorder %s278_s23, %s272_s21 }
  0x3c   : > { %p275_p10 = pneg %p274_p9  ;;  %p281_p3 = por %p280_p2, %p279_p12 }
  0x3e   : > { %p282_p4 = pnand %p281_p3, %p275_p10 }
  0x40   : > { %285 = shalt.err (!%p282_p4)
}
  0x41   : > { %s286_s24 = scalar_lea.hbm %s442_s19, 128  ;;  %s290_s27 = scalar_lea.hbm %s483_s1, 256 }
  0x42   : > { %p287_p7 = scmp.ne.s32.totalorder %s442_s19, %s286_s24  ;;  %p291_p13 = scmp.lt.u32.totalorder %s442_s19, %s483_s1 }
  0x43   : > { %p292_p1 = scmp.lt.u32.totalorder %s290_s27, %s286_s24  ;;  %p294_p5 = scmp.lt.u32.totalorder %s286_s24, %s442_s19 }
  0x44   : > { %p288_p8 = pnand %p287_p7, %p494_p6 }
  0x45   : > { %p293_p0 = por %p292_p1, %p291_p13 }
  0x46   : > { %p289_p11 = pneg %p288_p8 }
  0x47   : > { %p295_p9 = por %p294_p5, %p293_p0 }
  0x49   : > { %p296_p10 = pnand %p295_p9, %p289_p11 }
  0x4b   : > { %299 = shalt.err (!%p296_p10)
}
  0x4c   : > { %198 = dma.vmem_to_hbm [thread:$0]  (%p494_p6), %s437_s11, 128, %s442_s19, %s112_s20  }
  0x4d PF: > { %p210_p12 = scmp.ge.s32.totalorder %s338_s9, 2  ;;  %s137_s30 = sand.u32 1, %s326_s6  }
  0x4e   : > { %p495_p2 = scmp.ne.s32.totalorder %s488_s17, 0  ;;  %s138_s2 = scalar_lea.sflag [#allocation4], %s137_s30 }
  0x50   : > { %p205_p3 = pnand %p210_p12, %p495_p2 }
  0x52   : > { %321 = dma.done.wait (!%p205_p3), %s138_s2, 128  }
  0x53   : > { %323 = vsyncadd (!%p205_p3), %s138_s2, 4294967168  ;;  %p12_p4 = scmp.ge.s32.totalorder %s377_s12, 4   ;;  %s496_s6 = smov %s330_s7 }
  0x54   : > { %s497_s7 = smov %s334_s8  ;;  %s498_s8 = smov %s388_s15 }
  0x55   : > { %s499_s9 = smov %s377_s12  ;;  %14 = sbr.rel (!%p12_p4) target bundleno = 4 (0x4), region = 61 }
  0x5c   :  { %143 = vsyncpa [#allocation3], 1 }
  0x5d   :  { %145 = vsyncpa [#allocation3 + $0x1], 1 }
  0x5e   :  { %146 = vsyncpa [#allocation4], 1 }
  0x5f   :  { %148 = vsyncpa [#allocation4 + $0x1], 1 }

// kernel: tpu_custom_call.1
= control target key start
LH: loop header
LB: loop body
LE: loop exit
PB: predicated region body
PF: predicated region fallthrough
CT: control target
= control target key end

     0   :  { %s2520_s0 = inlined_call_operand.vmem [shape: bf16[2,8,32], index: 0, kind: input, shape index: {}]   ;;  %s2521_s1 = inlined_call_operand.vmem [shape: f32[2,1,8], index: 1, kind: input, shape index: {}]   ;;  %s2522_s2 = inlined_call_operand.vmem [shape: f32[8,32], index: 2, kind: input, shape index: {}]   ;;  %s2523_s3 = inlined_call_operand.vmem [shape: f32[1,32], index: 3, kind: input, shape index: {}]   ;;  %s2524_s4 = inlined_call_operand.vmem [shape: f32[1,32], index: 4, kind: input, shape index: {}]   ;;  %s2525_s5 = inlined_call_operand.vmem [shape: bf16[4,32,24], index: 5, kind: input, shape index: {}]   ;;  %s2526_s6 = inlined_call_operand.vmem [shape: f32[4,1,24], index: 6, kind: input, shape index: {}]   ;;  %s2527_s7 = inlined_call_operand.vmem [shape: bf16[4,8,32], index: 7, kind: input, shape index: {}]   ;;  %s2528_s8 = inlined_call_operand.vmem [shape: f32[1,32], index: 8, kind: input, shape index: {}]   ;;  %s2529_s9 = inlined_call_operand.vmem [shape: f32[1,32], index: 9, kind: input, shape index: {}]   ;;  %s2530_s10 = inlined_call_operand.vmem [shape: f32[1,32], index: 10, kind: input, shape index: {}]   ;;  %s2531_s11 = inlined_call_operand.vmem [shape: bf16[32,64], index: 11, kind: input, shape index: {}]   ;;  %s2532_s12 = inlined_call_operand.vmem [shape: f32[1,64], index: 12, kind: input, shape index: {}]   ;;  %s2533_s13 = inlined_call_operand.vmem [shape: bf16[64,32], index: 13, kind: input, shape index: {}]   ;;  %s2534_s14 = inlined_call_operand.vmem [shape: f32[1,32], index: 14, kind: input, shape index: {}]   ;;  %s2535_s15 = inlined_call_operand.hbm [shape: bf16[2,8,32], index: 15, kind: output, shape index: {}]  }
   0x1   :  { %2536 = sst [smem:[#allocation6_spill]] %s2520_s0 }
   0x2   :  { %2537 = sst [smem:[#allocation7_spill]] %s2521_s1 }
   0x3   :  { %2538 = sst [smem:[#allocation8_spill]] %s2522_s2 }
   0x4   :  { %2539 = sst [smem:[#allocation9_spill]] %s2523_s3 }
   0x5   :  { %20 = vsyncpa [#allocation3], 0 }
   0x6   :  { %22 = vsyncpa [#allocation3 + $0x1], 0  ;;  %s2191_s18 = smov 0   ;;  %s2193_s19 = smov 0  }
   0x7   :  { %s2195_s20 = smov 0   ;;  %s2197_s21 = smov 0  }
   0x8 LB: > { %s2212_s22 = sadd.s32 4294967295, %s2104_s21   ;;  %s1736_s23 = sadd.s32 4294967294, %s2104_s21   ;;  %s2104_s21 = sphi %s2197_s21, %s2551_s21   ;;  %s2100_s20 = sphi %s2195_s20, %s2550_s20   ;;  %s2096_s19 = sphi %s2193_s19, %s2549_s19   ;;  %s2092_s18 = sphi %s2191_s18, %s2548_s18  }
   0x9   : > { %s2216_s24 = sadd.s32 1, %s2104_s21   ;;  %s360_s25 = sadd.s32 1, %s2100_s20 }
   0xa   : > { %s357_s26 = ssub.s32 %s2104_s21, %s2216_s24  ;;  %p370_p0 = scmp.ne.s32.totalorder %s2100_s20, %s2096_s19 }
   0xb   : > { %p358_p1 = scmp.eq.s32.totalorder %s357_s26, 0  ;;  %p371_p2 = scmp.eq.s32.totalorder %s2212_s22, 1 }
   0xc   : > { %p376_p3 = scmp.ne.s32.totalorder %s2096_s19, %s2092_s18  ;;  %p377_p4 = scmp.eq.s32.totalorder %s1736_s23, 1 }
   0xd   : > { %s2227_s27 = scalar_select %p358_p1, %s2100_s20, %s360_s25  }
   0xe   : > { %p2229_p5 = por %p371_p2, %p370_p0  ;;  %p2233_p6 = por %p377_p4, %p376_p3 }
   0xf   : > { %2540 = sst [smem:[#allocation5_spill]] %s2227_s27  ;;  %p1739_p7 = scmp.ge.s32.totalorder %s2104_s21, 1 }
  0x10   : > { %p447_p8 = scmp.lt.s32.totalorder %s2104_s21, 3 }
  0x12   : > { %p448_p9 = pnand %p1739_p7, %p447_p8 }
  0x13   : > { %p497_p10 = scmp.lt.s32.totalorder (!%p448_p9), %s2212_s22, 1  ;;  %vm511_vm0 = vcmask (!%p448_p9), 261120   ;;  %s2543_s0 = sld [smem:[#allocation6_spill]] (!%p448_p9)  ;;  %v2004_v11 = vld [vmem:[%s2525_s5] sm:$0xff] (!%p448_p9)   ;;  %v2005_v12 = vld [vmem:[%s2525_s5 + $0x10] sm:$0xff] (!%p448_p9)   ;;  %v2106_v13 = vmov (!%p448_p9), 0.0  }
  0x14   : > { %451 = sbr.rel (%p448_p9) target bundleno = 2463 (0x99f), region = 80  ;;  %s2544_s2 = sld [smem:[#allocation8_spill]] (!%p448_p9)  ;;  %1837 = vmatprep.subr.bf16.mxu0 (!%p448_p9), %v2106_v13  ;;  %1845 = vmatprep.subr.bf16.mxu1 (!%p448_p9), %v2106_v13  ;;  %v2006_v14 = vld [vmem:[%s2525_s5 + $0x8] sm:$0xff] (!%p448_p9)   ;;  %v2007_v15 = vld [vmem:[%s2525_s5 + $0x18] sm:$0xff] (!%p448_p9)   ;;  %vm2107_vm1 = vmmov (!%p448_p9), 0   ;;  %v2008_v30 = vld [vmem:[%s2525_s5 + $0x20] sm:$0xff] (!%p448_p9)  }
  0x15   : > { %1838 = vmatpush3.bf16.msra.mxu0 (!%p448_p9), %v2004_v11  ;;  %1846 = vmatpush3.bf16.msra.mxu1 (!%p448_p9), %v2005_v12  ;;  %s2545_s3 = sld [smem:[#allocation9_spill]] (!%p448_p9)  ;;  %v1743_v27 = vld [vmem:[%s2524_s4] ss:$0 sm:$0xff] (!%p448_p9)  ;;  %v2009_v31 = vld [vmem:[%s2525_s5 + $0x30] sm:$0xff] (!%p448_p9)   ;;  %v2010_v33 = vld [vmem:[%s2525_s5 + $0x28] sm:$0xff] (!%p448_p9)   ;;  %vm819_vm4 = vcmask (!%p448_p9), 64512  }
  0x16   : > { %1839 = vmatprep.subr.bf16.mxu0 (!%p448_p9), %v2106_v13  ;;  %1847 = vmatprep.subr.bf16.mxu1 (!%p448_p9), %v2106_v13  ;;  %v2011_v34 = vld [vmem:[%s2525_s5 + $0x38] sm:$0xff] (!%p448_p9)   ;;  %v1744_v35 = vld [vmem:[%s2526_s6] ss:$0 sm:$0xff] (!%p448_p9)  ;;  %v1745_v37 = vld [vmem:[%s2526_s6 + $0x1] ss:$0 sm:$0xff] (!%p448_p9)  ;;  %s2546_s1 = sld [smem:[#allocation7_spill]] (!%p448_p9) }
  0x17   : > { %1841 = vmatprep.mubr.msk.bf16.mxu0 (!%p448_p9), %vm2107_vm1, %v2106_v13  ;;  %1849 = vmatprep.mubr.msk.bf16.mxu1 (!%p448_p9), %vm2107_vm1, %v2106_v13  ;;  %v1746_v48 = vld [vmem:[%s2526_s6 + $0x2] ss:$0 sm:$0xff] (!%p448_p9)  ;;  %v1747_v49 = vld [vmem:[%s2526_s6 + $0x3] ss:$0 sm:$0xff] (!%p448_p9)  ;;  %vm1066_vm5 = vcmask (!%p448_p9), 1043456   ;;  %vm1598_vm8 = vcmask (!%p448_p9), 523264  }
  0x18   : > { %s1790_s23 = sshll.u32 (!%p448_p9), %s2212_s22, 6  ;;  %vm1652_vm9 = vcmask (!%p448_p9), 257024  }
  0x19   : > { %1840 = vmatpush3.bf16.msra.mxu0 (!%p448_p9), %v2006_v14  ;;  %1848 = vmatpush3.bf16.msra.mxu1 (!%p448_p9), %v2007_v15 }
  0x1a   : > { %v509_v1 = vld [vmem:[%s2544_s2] sm:$0xff] (!%p448_p9)  ;;  %1853 = vmatprep.subr.bf16.mxu0 (!%p448_p9), %v2106_v13  ;;  %1861 = vmatprep.subr.bf16.mxu1 (!%p448_p9), %v2106_v13  ;;  %s494_s2 = sand.u32 (!%p448_p9), 1, %s2096_s19  }
  0x1b   : > { %s2241_s30 = scalar_select %p497_p10, %s2212_s22, 1  ;;  %v1742_v25 = vld [vmem:[%s2545_s3] ss:$0 sm:$0xff] }
  0x1c   : > { %s1655_s17 = scalar_lea.sflag [#allocation3], %s494_s2  ;;  %s2110_s22 = smov [#allocation2]  }
  0x1d   : > { %s1741_s16 = sshll.u32 %s2241_s30, 2  ;;  %s503_s26 = scalar_lea.vmem %s2546_s1, %s2241_s30 }
  0x1e   : > { %s500_s25 = scalar_lea.vmem %s2543_s0, %s1741_s16  ;;  %s2108_s0 = smov 120  }
  0x1f   : > { %v505_v0 = vld [vmem:[%s500_s25] sm:$0xf]  ;;  %s2109_s30 = smov 112   ;;  %s1740_s16 = sshll.u32 %s494_s2, 2 }
  0x20   : > { %v506_v2 = vunpack.c.l.bf16 %v505_v0  ;;  %s496_s25 = scalar_lea.vmem [#allocation2], %s1740_s16  ;;  %s2478_s1 = scalar_lea.hbm %s2535_s15, %s1790_s23 }
  0x21   : > { %s2046_s16 = sshll.u32 %s2110_s22, 4  ;;  %s2047_s16 = int_to_ptr.vmem [resolvable:$false] %s2046_s16 }
  0x22   : > { %v508_v3 = vmul.f32 5.656854, %v506_v2  ;;  %s2048_s3 = scalar_lea.vmem %s2047_s16, 128 }
  0x24   : > { %v2250_v4 = vadd.f32 %v509_v1, %v508_v3 }
  0x26   : > { %v512_v5 = vsel %vm511_vm0, %v2250_v4, 0.0 }
  0x27   : > { %513 = vadd.xlane.f32.xlu0 %v512_v5 }
  0xb4   : > { %v514_v6 = vpop.xlane.xlu0 %513 }
  0xb5   : > { %v516_v7 = vmul.f32 0.03125, %v514_v6 }
  0xb7   : > { %v517_v8 = vsub.f32 %v2250_v4, %v516_v7 }
  0xb9   : > { %v518_v9 = vmul.f32 %v517_v8, %v517_v8 }
  0xbb   : > { %v519_v10 = vsel %vm511_vm0, %v518_v9, 0.0 }
  0xbc   : > { %520 = vadd.xlane.f32.xlu0 %v519_v10 }
 0x149   : > { %v521_v16 = vpop.xlane.xlu0 %520 }
 0x14a   : > { %v522_v17 = vmul.f32 0.032258064, %v521_v16 }
 0x14c   : > { %2018 = vrsqrt.f32 %v522_v17  ;;  %vm525_vm2 = vcmp.eq.f32.partialorder %v522_v17, inf  ;;  %v528_v20 = vand.u32 2147483648, %v522_v17  ;;  %vm527_vm3 = vcmp.eq.f32.partialorder %v522_v17, 0.0 }
 0x156   : > { %v2019_v18 = vpop.eup %2018 }
 0x157   : > { %v524_v19 = vmul.f32 %v2019_v18, %v522_v17 }
 0x159   : > { %v526_v21 = vsel %vm525_vm2, %v522_v17, %v524_v19 }
 0x15a   : > { %v529_v22 = vsel %vm527_vm3, %v528_v20, %v526_v21 }
 0x15b   : > { %v530_v23 = vadd.f32 1e-06, %v529_v22 }
 0x15d   : > { %2020 = vrcp.f32 %v530_v23 }
 0x167   : > { %v2021_v24 = vpop.eup %2020 }
 0x168   : > { %v534_v26 = vmul.f32 %v2021_v24, %v517_v8  ;;  %v1760_v8 = vld [vmem:[%s503_s26] ss:$0 sm:$0xff]  ;;  %s1668_s26 = sshll.u32 %s496_s25, 4  ;;  %s2480_s26 = int_to_ptr.vmem [resolvable:$true] %s1668_s26 }
 0x169   : > { %s2042_s27 = scalar_lea.vmem %s2480_s26, 64  ;;  %p2049_p0 = scmp.lt.s32.totalorder %s2480_s26, %s2047_s16 }
 0x16a   : > { %v541_v28 = vmul.f32 %v1742_v25, %v534_v26  ;;  %p2043_p11 = scmp.ne.s32.totalorder %s2480_s26, %s2042_s27  ;;  %p2050_p1 = scmp.lt.s32.totalorder %s2048_s3, %s2042_s27 }
 0x16c   : > { %v549_v29 = vadd.f32 %v1743_v27, %v541_v28  ;;  %p2044_p12 = pnand %p2043_p11, %p2229_p5  ;;  %p2051_p2 = por %p2050_p1, %p2049_p0 }
 0x16e   : > { %v550_v32 = vpack.c.bf16 %v549_v29, %v549_v29  ;;  %p2045_p13 = pneg %p2044_p12 }
 0x170   : > { %1842 = vmatmul.mubr.msk.bf16.vlgmr.msra.gmra.mrb[0].mxu0 %vm511_vm0, %v550_v32  ;;  %1850 = vmatmul.mubr.msk.bf16.vlgmr.msra.gmra.mrb[0].mxu1 %vm511_vm0, %v550_v32  ;;  %p2052_p3 = pnand %p2051_p2, %p2045_p13 }
 0x171   : > { %1854 = vmatpush3.bf16.msra.mxu0 %v2008_v30  ;;  %1862 = vmatpush3.bf16.msra.mxu1 %v2009_v31 }
 0x172   : > { %1855 = vmatprep.subr.bf16.mxu0 %v2106_v13  ;;  %1863 = vmatprep.subr.bf16.mxu1 %v2106_v13 }
 0x173   : > { %1857 = vmatprep.mubr.msk.bf16.mxu0 %vm2107_vm1, %v2106_v13  ;;  %1865 = vmatprep.mubr.msk.bf16.mxu1 %vm2107_vm1, %v2106_v13 }
 0x175   : > { %1856 = vmatpush3.bf16.msra.mxu0 %v2010_v33  ;;  %1864 = vmatpush3.bf16.msra.mxu1 %v2011_v34 }
 0x176   : > { %1869 = vmatprep.subr.bf16.mxu0 %v2106_v13  ;;  %1875 = vmatprep.subr.bf16.mxu1 %v2106_v13 }
 0x178   : > { %1858 = vmatmul.mubr.msk.bf16.vlgmr.msra.gmra.mrb[4].mxu0 %vm511_vm0, %v550_v32  ;;  %1866 = vmatmul.mubr.msk.bf16.vlgmr.msra.gmra.mrb[4].mxu1 %vm511_vm0, %v550_v32 }
 0x179   : > { %1871 = vmatprep.mubr.msk.bf16.mxu0 %vm2107_vm1, %v2106_v13  ;;  %1877 = vmatprep.mubr.msk.bf16.mxu1 %vm2107_vm1, %v2106_v13 }
 0x243   : > { %v644_v36 = vpop.f32.mrb[0].mxu0  ;;  %v696_v38 = vpop.f32.mrb[0].mxu1 }
 0x244   : > { %v645_v39 = vadd.f32 %v1744_v35, %v644_v36  ;;  %v1843_v40 = vpop.f32.mrb[1].mxu0  ;;  %v1851_v41 = vpop.f32.mrb[1].mxu1  ;;  %v697_v45 = vadd.f32 %v1745_v37, %v696_v38 }
 0x245   : > { %v647_v42 = vpop.f32.mrb[2].mxu0  ;;  %v699_v43 = vpop.f32.mrb[2].mxu1 }
 0x246   : > { %v2318_v44 = vpack.c.bf16 %v645_v39, %v645_v39  ;;  %v1844_v46 = vpop.f32.mrb[3].mxu0  ;;  %v1852_v47 = vpop.f32.mrb[3].mxu1  ;;  %v2327_v50 = vpack.c.bf16 %v697_v45, %v697_v45 }
 0x248   : > { %817 = vrot.lane.b32.xlu1 %v2318_v44, %s2108_s0 }
 0x24b   : > { %v748_v51 = vpop.f32.mrb[4].mxu0  ;;  %v800_v52 = vpop.f32.mrb[4].mxu1 }
 0x24c   : > { %v749_v53 = vadd.f32 %v1746_v48, %v748_v51  ;;  %v801_v54 = vadd.f32 %v1747_v49, %v800_v52  ;;  %v1867_v55 = vpop.f32.mrb[5].mxu1  ;;  %867 = vrot.lane.b32.xlu1 %v2327_v50, %s2108_s0  ;;  %v1859_v56 = vpop.f32.mrb[5].mxu0 }
 0x24d   : > { %v751_v57 = vpop.f32.mrb[6].mxu0  ;;  %v803_v58 = vpop.f32.mrb[6].mxu1 }
 0x24e   : > { %v2330_v59 = vpack.c.bf16 %v749_v53, %v749_v53  ;;  %v2332_v60 = vpack.c.bf16 %v801_v54, %v801_v54  ;;  %v1860_v61 = vpop.f32.mrb[7].mxu0  ;;  %v1868_v62 = vpop.f32.mrb[7].mxu1 }
 0x250   : > { %965 = vrot.lane.b32.xlu1 %v2332_v60, %s2108_s0  ;;  %916 = vrot.lane.b32.xlu0 %v2330_v59, %s2108_s0 }
 0x2ba   : > { %v818_v63 = vpop.permute.xlu1 %817 }
 0x2bb   : > { %v824_v0 = vsel %vm819_vm4, %v818_v63, 0 }
 0x2bc   : > { %1870 = vmatpush3.bf16.xpose.msra.mxu0 %v824_v0 }
 0x2bd   : > { %1881 = vmatprep.subr.bf16.mxu0 %v2106_v13 }
 0x2be   : > { %v868_v1 = vpop.permute.xlu1 %867 }
 0x2bf   : > { %v873_v2 = vsel %vm819_vm4, %v868_v1, 0 }
 0x2c0   : > { %1876 = vmatpush3.bf16.xpose.msra.mxu1 %v873_v2 }
 0x2c1   : > { %1887 = vmatprep.subr.bf16.mxu1 %v2106_v13 }
 0x2c2   : > { %v917_v3 = vpop.permute.xlu0 %916  ;;  %v966_v6 = vpop.permute.xlu1 %965 }
 0x2c3   : > { %v922_v5 = vsel %vm819_vm4, %v917_v3, 0  ;;  %1872 = vmatmul.mubr.msk.bf16.vlgmr.msra.gmra.mrb[8].mxu0 %vm819_vm4, %v2318_v44  ;;  %v971_v7 = vsel %vm819_vm4, %v966_v6, 0 }
 0x2c4   : > { %1882 = vmatpush3.bf16.xpose.msra.mxu0 %v922_v5  ;;  %1883 = vmatprep.mubr.msk.bf16.mxu0 %vm2107_vm1, %v2106_v13 }
 0x2c5   : > { %1893 = vmatprep.subr.bf16.mxu0 %v2106_v13 }
 0x2c7   : > { %1878 = vmatmul.mubr.msk.bf16.vlgmr.msra.gmra.mrb[8].mxu1 %vm819_vm4, %v2327_v50 }
 0x2c8   : > { %1888 = vmatpush3.bf16.xpose.msra.mxu1 %v971_v7  ;;  %1889 = vmatprep.mubr.msk.bf16.mxu1 %vm2107_vm1, %v2106_v13 }
 0x2c9   : > { %1899 = vmatprep.subr.bf16.mxu1 %v2106_v13 }
 0x2cb   : > { %1884 = vmatmul.mubr.msk.bf16.vlgmr.msra.gmra.mrb[12].mxu0 %vm819_vm4, %v2330_v59 }
 0x2cc   : > { %1895 = vmatprep.mubr.msk.bf16.mxu0 %vm2107_vm1, %v2106_v13 }
 0x2cf   : > { %1890 = vmatmul.mubr.msk.bf16.vlgmr.msra.gmra.mrb[12].mxu1 %vm819_vm4, %v2332_v60 }
 0x2d0   : > { %1901 = vmatprep.mubr.msk.bf16.mxu1 %vm2107_vm1, %v2106_v13 }
 0x396   : > { %v860_v9 = vpop.f32.mrb[8].mxu0 }
 0x397   : > { %v861_v10 = vadd.f32 %v1760_v8, %v860_v9  ;;  %v1873_v11 = vpop.f32.mrb[9].mxu0 }
 0x398   : > { %v863_v12 = vpop.f32.mrb[10].mxu0 }
 0x399   : > { %v1874_v14 = vpop.f32.mrb[11].mxu0  ;;  %v1013_v15 = vsel %vm819_vm4, %v861_v10, -inf }
 0x39a   : > { %v909_v16 = vpop.f32.mrb[8].mxu1  ;;  %1014 = vmax.xlane.f32.xlu1 %v1013_v15 }
 0x39b   : > { %v910_v17 = vadd.f32 %v1760_v8, %v909_v16  ;;  %v1879_v18 = vpop.f32.mrb[9].mxu1  ;;  %v1258_v16 = vld [vmem:[%s2527_s7] sm:$0xf] }
 0x39c   : > { %v912_v19 = vpop.f32.mrb[10].mxu1  ;;  %v1769_v18 = vld [vmem:[%s2527_s7 + $0x4] sm:$0xf] }
 0x39d   : > { %v1880_v20 = vpop.f32.mrb[11].mxu1  ;;  %v1016_v21 = vsel %vm819_vm4, %v910_v17, -inf  ;;  %v1265_v19 = vsel %vm1066_vm5, %v1769_v18, 0 }
 0x39e   : > { %1017 = vmax.xlane.f32.xlu0 %v1016_v21  ;;  %v958_v22 = vpop.f32.mrb[12].mxu0  ;;  %v1774_v20 = vld [vmem:[%s2527_s7 + $0xc] sm:$0xf] }
 0x39f   : > { %v959_v23 = vadd.f32 %v1760_v8, %v958_v22  ;;  %v1885_v24 = vpop.f32.mrb[13].mxu0 }
 0x3a0   : > { %v961_v25 = vpop.f32.mrb[14].mxu0  ;;  %v1408_v24 = vsel %vm1066_vm5, %v1774_v20, 0 }
 0x3a1   : > { %v1886_v26 = vpop.f32.mrb[15].mxu0  ;;  %v1019_v27 = vsel %vm819_vm4, %v959_v23, -inf }
 0x3a2   : > { %v1007_v28 = vpop.f32.mrb[12].mxu1  ;;  %1020 = vmax.xlane.f32.xlu1 %v1019_v27  ;;  %v1772_v26 = vld [vmem:[%s2527_s7 + $0x8] sm:$0xf] }
 0x3a3   : > { %v1008_v29 = vadd.f32 %v1760_v8, %v1007_v28  ;;  %v1891_v30 = vpop.f32.mrb[13].mxu1 }
 0x3a4   : > { %v1010_v31 = vpop.f32.mrb[14].mxu1 }
 0x3a5   : > { %v1892_v32 = vpop.f32.mrb[15].mxu1  ;;  %v1022_v33 = vsel %vm819_vm4, %v1008_v29, -inf  ;;  %v1359_v31 = vsel %vm1066_vm5, %v1772_v26, 0 }
 0x3a6   : > { %1023 = vmax.xlane.f32.xlu1 %v1022_v33 }
 0x3b4   : > { %1061 = vrot.lane.b32.xlu0 %v2318_v44, %s2109_s30 }
 0x3b7   : > { %1110 = vrot.lane.b32.xlu1 %v2327_v50, %s2109_s30 }
 0x427   : > { %v1015_v34 = vpop.xlane.xlu1 %1014 }
 0x428   : > { %v1025_v35 = vsub.f32 %v861_v10, %v1015_v34 }
 0x42a   : > { %v1029_v36 = vmul.f32 1.442695, %v1025_v35 }
 0x42b   : > { %v1018_v37 = vpop.xlane.xlu0 %1017 }
 0x42c   : > { %2022 = vpow2.f32 %v1029_v36  ;;  %v1026_v38 = vsub.f32 %v910_v17, %v1018_v37  ;;  %v1311_v17 = vsel %vm1066_vm5, %v1258_v16, 0 }
 0x42e   : > { %v1031_v39 = vmul.f32 1.442695, %v1026_v38 }
 0x42f   : > { %v1062_v40 = vpop.permute.xlu0 %1061  ;;  %v1021_v41 = vpop.xlane.xlu1 %1020 }
 0x430   : > { %2024 = vpow2.f32 %v1031_v39  ;;  %v1068_v42 = vsel %vm1066_vm5, %v1062_v40, 0  ;;  %v1027_v43 = vsub.f32 %v959_v23, %v1021_v41 }
 0x431   : > { %1894 = vmatpush3.bf16.msra.mxu0 %v1068_v42 }
 0x432   : > { %v1033_v45 = vmul.f32 1.442695, %v1027_v43  ;;  %1905 = vmatprep.subr.bf16.mxu0 %v2106_v13 }
 0x433   : > { %v1024_v44 = vpop.xlane.xlu1 %1023 }
 0x434   : > { %2026 = vpow2.f32 %v1033_v45  ;;  %v1028_v46 = vsub.f32 %v1008_v29, %v1024_v44 }
 0x436   : > { %v2023_v47 = vpop.eup %2022  ;;  %v1035_v48 = vmul.f32 1.442695, %v1028_v46 }
 0x437   : > { %v1111_v49 = vpop.permute.xlu1 %1110  ;;  %v1037_v50 = vsel %vm819_vm4, %v2023_v47, 0.0 }
 0x438   : > { %2028 = vpow2.f32 %v1035_v48  ;;  %v1116_v51 = vsel %vm1066_vm5, %v1111_v49, 0  ;;  %1038 = vadd.xlane.f32.xlu1 %v1037_v50 }
 0x439   : > { %1900 = vmatpush3.bf16.msra.mxu1 %v1116_v51 }
 0x43a   : > { %v2025_v52 = vpop.eup %2024  ;;  %1911 = vmatprep.subr.bf16.mxu1 %v2106_v13 }
 0x43b   : > { %v1040_v53 = vsel %vm819_vm4, %v2025_v52, 0.0 }
 0x43c   : > { %1041 = vadd.xlane.f32.xlu1 %v1040_v53 }
 0x43e   : > { %v2027_v54 = vpop.eup %2026 }
 0x43f   : > { %v1043_v55 = vsel %vm819_vm4, %v2027_v54, 0.0 }
 0x440   : > { %1044 = vadd.xlane.f32.xlu0 %v1043_v55 }
 0x442   : > { %v2029_v56 = vpop.eup %2028 }
 0x443   : > { %v1046_v57 = vsel %vm819_vm4, %v2029_v56, 0.0 }
 0x444   : > { %1047 = vadd.xlane.f32.xlu1 %v1046_v57 }
 0x455   : > { %1158 = vrot.lane.b32.xlu1 %v2330_v59, %s2109_s30 }
 0x456   : > { %1206 = vrot.lane.b32.xlu0 %v2332_v60, %s2109_s30 }
 0x4c5   : > { %v1039_v58 = vpop.xlane.xlu1 %1038 }
 0x4c6   : > { %2030 = vrcp.f32 %v1039_v58 }
 0x4c9   : > { %v1042_v61 = vpop.xlane.xlu1 %1041 }
 0x4ca   : > { %2032 = vrcp.f32 %v1042_v61 }
 0x4cd   : > { %v1045_v62 = vpop.xlane.xlu0 %1044 }
 0x4ce   : > { %2034 = vrcp.f32 %v1045_v62 }
 0x4d0   : > { %v2031_v63 = vpop.eup %2030 }
 0x4d1   : > { %v1053_v0 = vmul.f32 %v2031_v63, %v2023_v47  ;;  %v1048_v1 = vpop.xlane.xlu1 %1047  ;;  %v1207_v59 = vpop.permute.xlu0 %1206 }
 0x4d2   : > { %2036 = vrcp.f32 %v1048_v1  ;;  %v1212_v10 = vsel %vm1066_vm5, %v1207_v59, 0  ;;  %v1776_v1 = vld [vmem:[%s2528_s8] ss:$0 sm:$0xff] }
 0x4d3   : > { %v1057_v2 = vpack.c.bf16 %v1053_v0, %v1053_v0 }
 0x4d4   : > { %v2033_v3 = vpop.eup %2032 }
 0x4d5   : > { %v1054_v5 = vmul.f32 %v2033_v3, %v2025_v52  ;;  %1896 = vmatmul.mubr.msk.bf16.vlgmr.msra.gmra.mrb[16].mxu0 %vm819_vm4, %v1057_v2  ;;  %v1159_v6 = vpop.permute.xlu1 %1158 }
 0x4d6   : > { %v1164_v7 = vsel %vm1066_vm5, %v1159_v6, 0  ;;  %1907 = vmatprep.mubr.msk.bf16.mxu0 %vm2107_vm1, %v2106_v13 }
 0x4d7   : > { %1906 = vmatpush3.bf16.msra.mxu0 %v1164_v7  ;;  %v1058_v60 = vpack.c.bf16 %v1054_v5, %v1054_v5 }
 0x4d8   : > { %v2035_v8 = vpop.eup %2034  ;;  %1917 = vmatprep.subr.bf16.mxu0 %v2106_v13 }
 0x4d9   : > { %v1055_v9 = vmul.f32 %v2035_v8, %v2027_v54  ;;  %1902 = vmatmul.mubr.msk.bf16.vlgmr.msra.gmra.mrb[16].mxu1 %vm819_vm4, %v1058_v60 }
 0x4da   : > { %1912 = vmatpush3.bf16.msra.mxu1 %v1212_v10  ;;  %1913 = vmatprep.mubr.msk.bf16.mxu1 %vm2107_vm1, %v2106_v13  ;;  %v2014_v10 = vld [vmem:[%s2533_s13] sm:$0xff]  }
 0x4db   : > { %v1059_v11 = vpack.c.bf16 %v1055_v9, %v1055_v9  ;;  %1923 = vmatprep.subr.bf16.mxu1 %v2106_v13  ;;  %v2012_v9 = vld [vmem:[%s2531_s11] sm:$0xff]  }
 0x4dc   : > { %v2037_v12 = vpop.eup %2036 }
 0x4dd   : > { %v1056_v14 = vmul.f32 %v2037_v12, %v2029_v56  ;;  %1908 = vmatmul.mubr.msk.bf16.vlgmr.msra.gmra.mrb[20].mxu0 %vm819_vm4, %v1059_v11  ;;  %v2015_v11 = vld [vmem:[%s2533_s13 + $0x8] sm:$0xff]  }
 0x4de   : > { %1919 = vmatprep.mubr.msk.bf16.mxu0 %vm2107_vm1, %v2106_v13  ;;  %1918 = vmatpush3.bf16.msra.mxu0 %v1265_v19 }
 0x4df   : > { %v1060_v15 = vpack.c.bf16 %v1056_v14, %v1056_v14  ;;  %1929 = vmatprep.subr.bf16.mxu0 %v2106_v13 }
 0x4e1   : > { %1914 = vmatmul.mubr.msk.bf16.vlgmr.msra.gmra.mrb[20].mxu1 %vm819_vm4, %v1060_v15 }
 0x4e2   : > { %1925 = vmatprep.mubr.msk.bf16.mxu1 %vm2107_vm1, %v2106_v13  ;;  %1924 = vmatpush3.bf16.msra.mxu1 %v1311_v17 }
 0x4e3   : > { %1935 = vmatprep.subr.bf16.mxu1 %v2106_v13 }
 0x5a8   : > { %v1104_v21 = vpop.f32.mrb[16].mxu0 }
 0x5a9   : > { %v1254_v22 = vpack.c.bf16 %v1104_v21, %v1104_v21  ;;  %v1897_v23 = vpop.f32.mrb[17].mxu0 }
 0x5aa   : > { %v1107_v25 = vpop.f32.mrb[18].mxu0 }
 0x5ab   : > { %v1898_v27 = vpop.f32.mrb[19].mxu0  ;;  %1926 = vmatmul.mubr.msk.bf16.vlgmr.msra.gmra.mrb[24].mxu1 %vm819_vm4, %v1254_v22  ;;  %v1777_v22 = vld [vmem:[%s2529_s9] ss:$0 sm:$0xff] }
 0x5ac   : > { %v1152_v28 = vpop.f32.mrb[16].mxu1  ;;  %1936 = vmatpush3.bf16.msra.mxu1 %v1408_v24  ;;  %1937 = vmatprep.mubr.msk.bf16.mxu1 %vm2107_vm1, %v2106_v13  ;;  %v1778_v24 = vld [vmem:[%s2530_s10] ss:$0 sm:$0xff] }
 0x5ad   : > { %v1255_v29 = vpack.c.bf16 %v1152_v28, %v1152_v28  ;;  %v1903_v30 = vpop.f32.mrb[17].mxu1  ;;  %1949 = vmatprep.subr.bf16.mxu1 %v2106_v13  ;;  %v2016_v28 = vld [vmem:[%s2533_s13 + $0x10] sm:$0xff]  }
 0x5ae   : > { %v1155_v32 = vpop.f32.mrb[18].mxu1  ;;  %v1779_v30 = vld [vmem:[%s2532_s12] ss:$0 sm:$0xff] }
 0x5af   : > { %v1904_v33 = vpop.f32.mrb[19].mxu1  ;;  %1920 = vmatmul.mubr.msk.bf16.vlgmr.msra.gmra.mrb[24].mxu0 %vm819_vm4, %v1255_v29  ;;  %v2017_v29 = vld [vmem:[%s2533_s13 + $0x18] sm:$0xff]  }
 0x5b0   : > { %v1200_v34 = vpop.f32.mrb[20].mxu0  ;;  %1930 = vmatpush3.bf16.msra.mxu0 %v1359_v31  ;;  %1931 = vmatprep.mubr.msk.bf16.mxu0 %vm2107_vm1, %v2106_v13 }
 0x5b1   : > { %v1909_v35 = vpop.f32.mrb[21].mxu0  ;;  %1941 = vmatprep.subr.bf16.mxu0 %v2106_v13  ;;  %v1256_v39 = vpack.c.bf16 %v1200_v34, %v1200_v34 }
 0x5b2   : > { %v1203_v36 = vpop.f32.mrb[22].mxu0 }
 0x5b3   : > { %v1910_v37 = vpop.f32.mrb[23].mxu0 }
 0x5b4   : > { %v1248_v38 = vpop.f32.mrb[20].mxu1 }
 0x5b5   : > { %v1257_v40 = vpack.c.bf16 %v1248_v38, %v1248_v38  ;;  %v1915_v41 = vpop.f32.mrb[21].mxu1  ;;  %v1788_v38 = vld [vmem:[%s2534_s14] ss:$0 sm:$0xff] }
 0x5b6   : > { %v1251_v42 = vpop.f32.mrb[22].mxu1 }
 0x5b7   : > { %v1916_v43 = vpop.f32.mrb[23].mxu1  ;;  %1932 = vmatmul.mubr.msk.bf16.vlgmr.msra.gmra.mrb[28].mxu0 %vm819_vm4, %v1256_v39  ;;  %1938 = vmatmul.mubr.msk.bf16.vlgmr.msra.gmra.mrb[28].mxu1 %vm819_vm4, %v1257_v40 }
 0x5b8   : > { %1945 = vmatprep.mubr.msk.bf16.mxu0 %vm2107_vm1, %v2106_v13  ;;  %1957 = vmatprep.mubr.msk.bf16.mxu1 %vm2107_vm1, %v2106_v13 }
 0x5b9   : > { %1942 = vmatpush3.bf16.msra.mxu0 %v2012_v9  ;;  %1950 = vmatpush3.bf16.msra.mxu1 %v2014_v10 }
 0x5ba   : > { %1943 = vmatprep.subr.bf16.mxu0 %v2106_v13  ;;  %1951 = vmatprep.subr.bf16.mxu1 %v2106_v13 }
 0x5bd   : > { %1952 = vmatpush3.bf16.msra.mxu1 %v2015_v11 }
 0x5be   : > { %1953 = vmatprep.subr.bf16.mxu1 %v2106_v13 }
 0x5c1   : > { %1954 = vmatpush3.bf16.msra.mxu1 %v2016_v28 }
 0x5c2   : > { %1955 = vmatprep.subr.bf16.mxu1 %v2106_v13 }
 0x5c5   : > { %1956 = vmatpush3.bf16.msra.mxu1 %v2017_v29 }
 0x67e   : > { %v1347_v45 = vpop.f32.mrb[24].mxu1 }
 0x67f   : > { %v1927_v44 = vpop.f32.mrb[25].mxu1 }
 0x680   : > { %v1350_v46 = vpop.f32.mrb[26].mxu1 }
 0x681   : > { %v1928_v47 = vpop.f32.mrb[27].mxu1 }
 0x682   : > { %v1301_v48 = vpop.f32.mrb[24].mxu0 }
 0x683   : > { %v1348_v49 = vadd.f32 %v1347_v45, %v1301_v48  ;;  %v1921_v50 = vpop.f32.mrb[25].mxu0 }
 0x684   : > { %v1304_v51 = vpop.f32.mrb[26].mxu0 }
 0x685   : > { %v1922_v52 = vpop.f32.mrb[27].mxu0 }
 0x68a   : > { %v1395_v53 = vpop.f32.mrb[28].mxu0  ;;  %v1444_v54 = vpop.f32.mrb[28].mxu1 }
 0x68b   : > { %v1401_v55 = vadd.f32 %v1395_v53, %v1348_v49  ;;  %v1933_v56 = vpop.f32.mrb[29].mxu0  ;;  %v1939_v57 = vpop.f32.mrb[29].mxu1 }
 0x68c   : > { %v1398_v58 = vpop.f32.mrb[30].mxu0  ;;  %v1447_v61 = vpop.f32.mrb[30].mxu1 }
 0x68d   : > { %v1450_v62 = vadd.f32 %v1444_v54, %v1401_v55  ;;  %v1934_v63 = vpop.f32.mrb[31].mxu0  ;;  %v1940_v0 = vpop.f32.mrb[31].mxu1 }
 0x68f   : > { %v1451_v2 = vadd.f32 %v1450_v62, %v2250_v4  ;;  %v2013_v4 = vld [vmem:[%s2531_s11 + $0x8] sm:$0xff]  }
 0x690   : > { %1944 = vmatpush3.bf16.msra.mxu0 %v2013_v4 }
 0x691   : > { %v1459_v3 = vadd.f32 %v1776_v1, %v1451_v2 }
 0x693   : > { %v1460_v5 = vsel %vm511_vm0, %v1459_v3, 0.0 }
 0x694   : > { %1461 = vadd.xlane.f32.xlu1 %v1460_v5 }
 0x721   : > { %v1462_v6 = vpop.xlane.xlu1 %1461 }
 0x722   : > { %v1463_v59 = vmul.f32 0.03125, %v1462_v6 }
 0x724   : > { %v1464_v7 = vsub.f32 %v1459_v3, %v1463_v59 }
 0x726   : > { %v1465_v60 = vmul.f32 %v1464_v7, %v1464_v7 }
 0x728   : > { %v1466_v8 = vsel %vm511_vm0, %v1465_v60, 0.0 }
 0x729   : > { %1467 = vadd.xlane.f32.xlu0 %v1466_v8 }
 0x7b6   : > { %v1468_v12 = vpop.xlane.xlu0 %1467 }
 0x7b7   : > { %v1469_v14 = vmul.f32 0.032258064, %v1468_v12 }
 0x7b9   : > { %2038 = vrsqrt.f32 %v1469_v14  ;;  %vm1472_vm6 = vcmp.eq.f32.partialorder %v1469_v14, inf  ;;  %v1475_v17 = vand.u32 2147483648, %v1469_v14  ;;  %vm1474_vm7 = vcmp.eq.f32.partialorder %v1469_v14, 0.0 }
 0x7c3   : > { %v2039_v15 = vpop.eup %2038 }
 0x7c4   : > { %v1471_v16 = vmul.f32 %v2039_v15, %v1469_v14 }
 0x7c6   : > { %v1473_v18 = vsel %vm1472_vm6, %v1469_v14, %v1471_v16 }
 0x7c7   : > { %v1476_v19 = vsel %vm1474_vm7, %v1475_v17, %v1473_v18 }
 0x7c8   : > { %v1477_v20 = vadd.f32 1e-06, %v1476_v19 }
 0x7ca   : > { %2040 = vrcp.f32 %v1477_v20 }
 0x7d4   : > { %v2041_v21 = vpop.eup %2040 }
 0x7d5   : > { %v1481_v23 = vmul.f32 %v2041_v21, %v1464_v7 }
 0x7d7   : > { %v1488_v25 = vmul.f32 %v1777_v22, %v1481_v23 }
 0x7d9   : > { %v1496_v26 = vadd.f32 %v1778_v24, %v1488_v25 }
 0x7db   : > { %v1497_v27 = vpack.c.bf16 %v1496_v26, %v1496_v26 }
 0x7dd   : > { %1946 = vmatmul.mubr.msk.bf16.vlgmr.msra.gmra.mrb[32].mxu0 %vm511_vm0, %v1497_v27 }
 0x8b0   : > { %v1558_v31 = vpop.f32.mrb[32].mxu0 }
 0x8b1   : > { %v1559_v32 = vadd.f32 %v1779_v30, %v1558_v31  ;;  %v1947_v33 = vpop.f32.mrb[33].mxu0 }
 0x8b2   : > { %v1561_v34 = vpop.f32.mrb[34].mxu0 }
 0x8b3   : > { %v1564_v35 = vmax.f32 %v1559_v32, 0.0  ;;  %v1948_v36 = vpop.f32.mrb[35].mxu0 }
 0x8b5   : > { %v1565_v37 = vpack.c.bf16 %v1564_v35, %v1564_v35 }
 0x8b7   : > { %1958 = vmatmul.mubr.msk.bf16.vlgmr.msra.gmra.mrb[32].mxu1 %vm1598_vm8, %v1565_v37 }
 0x98a   : > { %v1636_v13 = vpop.f32.mrb[32].mxu1 }
 0x98b   : > { %v1642_v39 = vadd.f32 %v1636_v13, %v1459_v3  ;;  %v1959_v40 = vpop.f32.mrb[33].mxu1 }
 0x98c   : > { %v1639_v41 = vpop.f32.mrb[34].mxu1 }
 0x98d   : > { %v1650_v42 = vadd.f32 %v1788_v38, %v1642_v39  ;;  %v1960_v43 = vpop.f32.mrb[35].mxu1 }
 0x98f   : > { %v1651_v45 = vpack.c.bf16 %v1650_v42, %v1650_v42 }
 0x991   : > { %1653 = vst.msk [vmem:[%s496_s25] sm:$0xf] %vm1652_vm9, %v1651_v45 }
 0x992   : > { %2055 = shalt.err (!%p2052_p3)
}
 0x993   : > { %s2056_s2 = scalar_lea.hbm %s2478_s1, 64  ;;  %s2060_s30 = scalar_lea.hbm %s2535_s15, 128 }
 0x994   : > { %p2057_p4 = scmp.ne.s32.totalorder %s2478_s1, %s2056_s2  ;;  %p2061_p9 = scmp.lt.u32.totalorder %s2478_s1, %s2535_s15 }
 0x995   : > { %p2062_p10 = scmp.lt.u32.totalorder %s2060_s30, %s2056_s2  ;;  %p2064_p12 = scmp.lt.u32.totalorder %s2056_s2, %s2478_s1 }
 0x996   : > { %p2058_p7 = pnand %p2057_p4, %p2229_p5 }
 0x997   : > { %p2063_p11 = por %p2062_p10, %p2061_p9 }
 0x998   : > { %p2059_p8 = pneg %p2058_p7 }
 0x999   : > { %p2065_p13 = por %p2064_p12, %p2063_p11 }
 0x99b   : > { %p2066_p0 = pnand %p2065_p13, %p2059_p8 }
 0x99d   : > { %2069 = shalt.err (!%p2066_p0)
}
 0x99e   : > { %1961 = dma.vmem_to_hbm [thread:$0]  (%p2229_p5), %s2480_s26, 64, %s2478_s1, %s1655_s17  }
 0x99f PF: > { %p1967_p1 = scmp.ge.s32.totalorder %s2104_s21, 2  ;;  %s1680_s3 = sand.u32 1, %s2092_s18  }
 0x9a0   : > { %s1681_s27 = scalar_lea.sflag [#allocation3], %s1680_s3 }
 0x9a1   : > { %p1964_p2 = pnand %p1967_p1, %p2233_p6 }
 0x9a3   : > { %2087 = dma.done.wait (!%p1964_p2), %s1681_s27, 64  }
 0x9a4   : > { %2089 = vsyncadd (!%p1964_p2), %s1681_s27, 4294967232  ;;  %s2547_s16 = sld [smem:[#allocation5_spill]]  ;;  %p25_p3 = scmp.ge.s32.totalorder %s2216_s24, 4  }
 0x9a5   : > { %s2548_s18 = smov %s2096_s19  ;;  %s2549_s19 = smov %s2100_s20 }
 0x9a6   : > { %s2551_s21 = smov %s2216_s24  ;;  %27 = sbr.rel (!%p25_p3) target bundleno = 8 (0x8), region = 121 }
 0x9aa   : > { %s2550_s20 = smov %s2547_s16 }
 0x9ad   :  { %1686 = vsyncpa [#allocation3], 1 }
 0x9ae   :  { %1688 = vsyncpa [#allocation3 + $0x1], 1 }

</bundles_post_ra>
